<compile_context>
chip_gen: v7x
topology: tpu7x:2x2x1
jax: 0.10.0
libtpu: 0.0.40
codegen_flags: <defaults>
</compile_context>

<pallas_src>
import numpy as np
import jax
import jax.numpy as jnp
from jax import lax
from jax.experimental import pallas as pl
from jax.experimental.pallas import tpu as pltpu

NEG_SLOPE = 0.2


def _leaky(v):
    return jnp.where(v >= 0, v, NEG_SLOPE * v)


def _edge_masks(Hu, Wu):
    """Packed (8, HW) f32 validity masks for the 8 non-centre 3x3 taps ('same' padding),
    in (ky, kx) row-major order with the centre tap skipped."""
    HW = Hu * Wu
    hh = np.arange(HW) // Wu
    ww = np.arange(HW) % Wu
    rows = []
    for ky in range(3):
        for kx in range(3):
            dy, dx = ky - 1, kx - 1
            if dy == 0 and dx == 0:
                continue
            m = np.ones(HW, dtype=bool)
            if dy < 0:
                m &= hh >= -dy
            if dy > 0:
                m &= hh < Hu - dy
            if dx < 0:
                m &= ww >= -dx
            if dx > 0:
                m &= ww < Wu - dx
            rows.append(m)
    return jnp.asarray(np.stack(rows).astype(np.float32))        # (8, HW)


def _stack_stage1_weights(w1, wsc, wsk, Cin, Cs, Cout):
    """(2*Cout, 9*Cin+Cs).  Rows 0:Cout  -> conv1 taps (cols [t*Cin:(t+1)*Cin]) plus the
    skip 1x1 (last Cs cols).  Rows Cout:2*Cout -> shortcut 1x1, reading only the
    unshifted centre-tap columns."""
    K1 = 9 * Cin + Cs
    m = jnp.zeros((2 * Cout, K1), jnp.float32)
    for t in range(9):
        ky, kx = t // 3, t % 3
        m = m.at[:Cout, t * Cin:(t + 1) * Cin].set(w1[ky, kx].T)
    m = m.at[:Cout, 9 * Cin:].set(wsk.T)
    m = m.at[Cout:, 4 * Cin:5 * Cin].set(wsc.T)                  # centre tap is t == 4
    return m


def _stack_stage2_weights(w2, Cout):
    """(Cout, 9*Cout): cols [t*Cout:(t+1)*Cout] = conv2 tap t (transposed)."""
    K2 = 9 * Cout
    m = jnp.zeros((Cout, K2), jnp.float32)
    for t in range(9):
        ky, kx = t // 3, t % 3
        m = m.at[:, t * Cout:(t + 1) * Cout].set(w2[ky, kx].T)
    return m


def _make_kernel(Cin, Cs, Cout, Hu, Wu):
    HW = Hu * Wu
    # Static per-tap lane-roll shift for a 3x3 'same' conv in the (C, HW) layout:
    # shifted[:, p] = src[:, p + dy*Wu + dx]  (edges zeroed by the packed masks).
    taps = []
    for ky in range(3):
        for kx in range(3):
            dy, dx = ky - 1, kx - 1
            taps.append((dy, dx, (-(dy * Wu + dx)) % HW))

    def kernel(x_ref, sk_ref, w1_ref, w2_ref, mask_ref, bias_ref,
               out_ref, mid_ref, scr1, scr2):
        x_rows = x_ref[0]      # (Cin, HW): leaky(x) already applied & 2x upsampled (wrapper)
        sk_rows = sk_ref[0]    # (Cs,  HW): skip, nearest-resized to (Hu, Wu)

        def fill_im2col(scr, rows, c):
            """scr rows [t*c:(t+1)*c] = tap-t shifted + edge-masked copy of `rows`."""
            j = 0
            for t, (dy, dx, shift) in enumerate(taps):
                if dy == 0 and dx == 0:
                    piece = rows                                    # centre tap: as-is
                else:
                    piece = pltpu.roll(rows, shift=shift, axis=1)   # XLU lane rotate
                    piece = piece * mask_ref[j:j + 1, :]            # zero 'same'-pad edges
                    j += 1
                scr[t * c:(t + 1) * c, :] = piece

        # ---- stage 1: conv1 (9 taps) + skip-1x1 + shortcut-1x1 fused into ONE matmul
        fill_im2col(scr1, x_rows, Cin)
        scr1[9 * Cin:, :] = sk_rows                                 # skip rows, unshifted
        y1 = jnp.dot(w1_ref[...], scr1[...],
                     preferred_element_type=jnp.float32)            # (2*Cout, HW)

        x_w = y1[:Cout, :] + bias_ref[:, 0:1]      # conv1(leaky x) + skip1x1 + (b1 + bsk)
        x_skip = y1[Cout:, :] + bias_ref[:, 1:2]   # shortcut1x1(leaky x) + bsc
        xw_act = _leaky(x_w)                       # == leaky(x_mid) w/ PyTorch aliasing
        mid_ref[0] = xw_act.astype(mid_ref.dtype)  # lane-dense (Cout, HW) store

        # ---- stage 2: conv2 (9 taps) as ONE matmul
        fill_im2col(scr2, xw_act, Cout)
        y2 = jnp.dot(w2_ref[...], scr2[...],
                     preferred_element_type=jnp.float32)            # (Cout, HW)
        out_ref[0] = (y2 + bias_ref[:, 2:3] + x_skip).astype(out_ref.dtype)

    return kernel


def autogan_gen_block(x_nchw, skip_nchw, params):
    """x_nchw: (N, Cin, H, W); skip_nchw: (N, Cs, Hs, Ws). Returns (out, mid) in NCHW."""
    w1, b1, w2, b2, wsc, bsc, wsk, bsk = params
    N, Cin, H, W = x_nchw.shape
    Cout = w1.shape[-1]
    Cs = wsk.shape[0]
    Hu, Wu = 2 * H, 2 * W
    HW = Hu * Wu
    K1 = 9 * Cin + Cs
    K2 = 9 * Cout

    # leaky_relu commutes with nearest upsampling -> apply on the small tensor so it
    # fuses into the single broadcast+reshape upsample op below.
    xl = _leaky(x_nchw.astype(jnp.float32))
    xu = jnp.broadcast_to(xl[:, :, :, None, :, None],
                          (N, Cin, H, 2, W, 2)).reshape(N, Cin, HW)       # (N, Cin, HW)

    Hs, Ws = skip_nchw.shape[2], skip_nchw.shape[3]
    fh, fw = Hu // Hs, Wu // Ws
    # TODO(synk): non-integer nearest resize factors are not handled (unused by this config).
    sku = jnp.broadcast_to(skip_nchw.astype(jnp.float32)[:, :, :, None, :, None],
                           (N, Cs, Hs, fh, Ws, fw)).reshape(N, Cs, HW)    # (N, Cs, HW)

    w1_big = _stack_stage1_weights(w1, wsc, wsk, Cin, Cs, Cout)           # (2*Cout, K1)
    w2_big = _stack_stage2_weights(w2, Cout)                              # (Cout,  K2)
    biases = jnp.stack([b1 + bsk, bsc, b2], axis=1).astype(jnp.float32)   # (Cout, 3)
    masks = _edge_masks(Hu, Wu)                                           # (8, HW)

    kernel = _make_kernel(Cin, Cs, Cout, Hu, Wu)

    out_flat, mid_flat = pl.pallas_call(
        kernel,
        out_shape=(jax.ShapeDtypeStruct((N, Cout, HW), jnp.float32),
                   jax.ShapeDtypeStruct((N, Cout, HW), jnp.float32)),
        grid=(N,),
        in_specs=[
            pl.BlockSpec((1, Cin, HW), lambda n: (n, 0, 0)),   # leaky(x), 2x upsampled
            pl.BlockSpec((1, Cs, HW), lambda n: (n, 0, 0)),    # skip, resized to (Hu,Wu)
            pl.BlockSpec((2 * Cout, K1), lambda n: (0, 0)),    # stacked stage-1 weights (const)
            pl.BlockSpec((Cout, K2), lambda n: (0, 0)),        # stacked stage-2 weights (const)
            pl.BlockSpec((8, HW), lambda n: (0, 0)),           # packed edge masks (const)
            pl.BlockSpec((Cout, 3), lambda n: (0, 0)),         # [b1+bsk, bsc, b2] (const)
        ],
        out_specs=(pl.BlockSpec((1, Cout, HW), lambda n: (n, 0, 0)),
                   pl.BlockSpec((1, Cout, HW), lambda n: (n, 0, 0))),
        scratch_shapes=[pltpu.VMEM((K1, HW), jnp.float32),     # stage-1 im2col stack
                        pltpu.VMEM((K2, HW), jnp.float32)],    # stage-2 im2col stack
        compiler_params=pltpu.CompilerParams(
            dimension_semantics=("parallel",)),                # one image per step; 2 TCs on v7x
    )(xu, sku, w1_big, w2_big, masks, biases)

    # already channel-first: only a reshape, no transpose
    out = out_flat.reshape(N, Cout, Hu, Wu)
    mid = mid_flat.reshape(N, Cout, Hu, Wu)
    return out, mid


def reference(x, skip, params):
    """Pure-JAX NCHW reference mirroring the PyTorch forward exactly."""
    w1, b1, w2, b2, wsc, bsc, wsk, bsk = params

    def up2(t):
        return jnp.repeat(jnp.repeat(t, 2, axis=2), 2, axis=3)

    def conv(t, w_hwio, b, pad):
        y = lax.conv_general_dilated(
            t, w_hwio, window_strides=(1, 1),
            padding=[(pad, pad), (pad, pad)],
            dimension_numbers=('NCHW', 'HWIO', 'NCHW'))
        return y + b.reshape(1, -1, 1, 1)

    xu = up2(x)
    xl = _leaky(xu)
    x_skip = conv(xl, wsc.reshape(1, 1, *wsc.shape), bsc, 0)
    x_mid = conv(xl, w1, b1, 1)
    sku = up2(skip)                       # nearest resize to x_mid spatial size
    x_w = x_mid + conv(sku, wsk.reshape(1, 1, *wsk.shape), bsk, 0)
    out = conv(_leaky(x_w), w2, b2, 1) + x_skip
    return out, _leaky(x_w)


if __name__ == "__main__":
    key = jax.random.PRNGKey(0)
    ks = jax.random.split(key, 10)
    N, Cin, Cout, Cs, H, W = 2, 4, 8, 4, 16, 16

    def kaiming(k, kh, kw, ci, co):
        fan_in = kh * kw * ci
        return jax.random.normal(k, (kh, kw, ci, co), jnp.float32) * np.sqrt(2.0 / fan_in)

    w1 = kaiming(ks[0], 3, 3, Cin, Cout)                      # conv1 (HWIO)
    b1 = 0.05 * jax.random.normal(ks[1], (Cout,), jnp.float32)
    w2 = kaiming(ks[2], 3, 3, Cout, Cout)                     # conv2 (HWIO)
    b2 = 0.05 * jax.random.normal(ks[3], (Cout,), jnp.float32)
    wsc = kaiming(ks[4], 1, 1, Cin, Cout).reshape(Cin, Cout)  # shortcut 1x1
    bsc = 0.05 * jax.random.normal(ks[5], (Cout,), jnp.float32)
    wsk = kaiming(ks[6], 1, 1, Cs, Cout).reshape(Cs, Cout)    # skip 1x1
    bsk = 0.05 * jax.random.normal(ks[7], (Cout,), jnp.float32)
    params = (w1, b1, w2, b2, wsc, bsc, wsk, bsk)

    x = jax.random.normal(ks[8], (N, Cin, H, W), jnp.float32)
    skip = jax.random.normal(ks[9], (N, Cs, H, W), jnp.float32)

    fwd = jax.jit(autogan_gen_block)
    out, mid = jax.block_until_ready(fwd(x, skip, params))

    ref_out, ref_mid = reference(x, skip, params)
    np.testing.assert_allclose(np.asarray(out), np.asarray(ref_out), rtol=1e-4, atol=1e-4)
    np.testing.assert_allclose(np.asarray(mid), np.asarray(ref_mid), rtol=1e-4, atol=1e-4)
    print("KERNEL_OK")
</pallas_src>

<mosaic_0001>
module attributes {stable_mosaic.version = 11 : i64} {
  func.func @kernel(%arg0: i32, %arg1: memref<1x4x1024xf32, #tpu.memory_space<vmem>>, %arg2: memref<1x4x1024xf32, #tpu.memory_space<vmem>>, %arg3: memref<16x40xf32, #tpu.memory_space<vmem>>, %arg4: memref<8x72xf32, #tpu.memory_space<vmem>>, %arg5: memref<8x1024xf32, #tpu.memory_space<vmem>>, %arg6: memref<8x3xf32, #tpu.memory_space<vmem>>, %arg7: memref<1x8x1024xf32, #tpu.memory_space<vmem>>, %arg8: memref<1x8x1024xf32, #tpu.memory_space<vmem>>, %arg9: memref<40x1024xf32, #tpu.memory_space<vmem>>, %arg10: memref<72x1024xf32, #tpu.memory_space<vmem>>) attributes {dimension_semantics = [#tpu.dimension_semantics<parallel>], iteration_bounds = array<i64: 2>, scalar_prefetch = 0 : i64, scratch_operands = 2 : i64, tpu.core_type = #tpu.core_type<tc>, window_params = [{transform_indices = @transform_0, window_bounds = array<i64: 1, 4, 1024>}, {transform_indices = @transform_1, window_bounds = array<i64: 1, 4, 1024>}, {pipeline_mode = #tpu.pipeline_mode<synchronous>, transform_indices = @transform_2, window_bounds = array<i64: 16, 40>}, {pipeline_mode = #tpu.pipeline_mode<synchronous>, transform_indices = @transform_3, window_bounds = array<i64: 8, 72>}, {pipeline_mode = #tpu.pipeline_mode<synchronous>, transform_indices = @transform_4, window_bounds = array<i64: 8, 1024>}, {pipeline_mode = #tpu.pipeline_mode<synchronous>, transform_indices = @transform_5, window_bounds = array<i64: 8, 3>}, {transform_indices = @transform_6, window_bounds = array<i64: 1, 8, 1024>}, {transform_indices = @transform_7, window_bounds = array<i64: 1, 8, 1024>}]} {
    %c0 = arith.constant 0 : index
    %c0_0 = arith.constant 0 : index
    %c0_1 = arith.constant 0 : index
    %0 = vector.load %arg1[%c0, %c0_0, %c0_1] : memref<1x4x1024xf32, #tpu.memory_space<vmem>>, vector<1x4x1024xf32>
    %1 = vector.shape_cast %0 : vector<1x4x1024xf32> to vector<4x1024xf32>
    %c0_2 = arith.constant 0 : index
    %c0_3 = arith.constant 0 : index
    %c0_4 = arith.constant 0 : index
    %2 = vector.load %arg2[%c0_2, %c0_3, %c0_4] : memref<1x4x1024xf32, #tpu.memory_space<vmem>>, vector<1x4x1024xf32>
    %3 = vector.shape_cast %2 : vector<1x4x1024xf32> to vector<4x1024xf32>
    %c33_i32 = arith.constant 33 : i32
    %4 = tpu.dynamic_rotate %1 by %c33_i32 dim 1 : vector<4x1024xf32>, i32 -> vector<4x1024xf32>
    %c0_5 = arith.constant 0 : index
    %c0_6 = arith.constant 0 : index
    %5 = vector.load %arg5[%c0_5, %c0_6] : memref<8x1024xf32, #tpu.memory_space<vmem>>, vector<1x1024xf32>
    %6 = vector.broadcast %5 : vector<1x1024xf32> to vector<4x1024xf32>
    %7 = arith.mulf %4, %6 : vector<4x1024xf32>
    %c0_7 = arith.constant 0 : index
    %c0_8 = arith.constant 0 : index
    %8 = vector.load %arg9[%c0_7, %c0_8] : memref<40x1024xf32, #tpu.memory_space<vmem>>, vector<4x1024xf32>
    tpu.vector_store %arg9[%c0_7, %c0_8], %7 {strides = array<i32>} : memref<40x1024xf32, #tpu.memory_space<vmem>>, vector<4x1024xf32>,
    %c32_i32 = arith.constant 32 : i32
    %9 = tpu.dynamic_rotate %1 by %c32_i32 dim 1 : vector<4x1024xf32>, i32 -> vector<4x1024xf32>
    %c1 = arith.constant 1 : index
    %c0_9 = arith.constant 0 : index
    %10 = vector.load %arg5[%c1, %c0_9] : memref<8x1024xf32, #tpu.memory_space<vmem>>, vector<1x1024xf32>
    %11 = vector.broadcast %10 : vector<1x1024xf32> to vector<4x1024xf32>
    %12 = arith.mulf %9, %11 : vector<4x1024xf32>
    %c4 = arith.constant 4 : index
    %c0_10 = arith.constant 0 : index
    %13 = vector.load %arg9[%c4, %c0_10] : memref<40x1024xf32, #tpu.memory_space<vmem>>, vector<4x1024xf32>
    tpu.vector_store %arg9[%c4, %c0_10], %12 {strides = array<i32>} : memref<40x1024xf32, #tpu.memory_space<vmem>>, vector<4x1024xf32>,
    %c31_i32 = arith.constant 31 : i32
    %14 = tpu.dynamic_rotate %1 by %c31_i32 dim 1 : vector<4x1024xf32>, i32 -> vector<4x1024xf32>
    %c2 = arith.constant 2 : index
    %c0_11 = arith.constant 0 : index
    %15 = vector.load %arg5[%c2, %c0_11] : memref<8x1024xf32, #tpu.memory_space<vmem>>, vector<1x1024xf32>
    %16 = vector.broadcast %15 : vector<1x1024xf32> to vector<4x1024xf32>
    %17 = arith.mulf %14, %16 : vector<4x1024xf32>
    %c8 = arith.constant 8 : index
    %c0_12 = arith.constant 0 : index
    %18 = vector.load %arg9[%c8, %c0_12] : memref<40x1024xf32, #tpu.memory_space<vmem>>, vector<4x1024xf32>
    tpu.vector_store %arg9[%c8, %c0_12], %17 {strides = array<i32>} : memref<40x1024xf32, #tpu.memory_space<vmem>>, vector<4x1024xf32>,
    %c1_i32 = arith.constant 1 : i32
    %19 = tpu.dynamic_rotate %1 by %c1_i32 dim 1 : vector<4x1024xf32>, i32 -> vector<4x1024xf32>
    %c3 = arith.constant 3 : index
    %c0_13 = arith.constant 0 : index
    %20 = vector.load %arg5[%c3, %c0_13] : memref<8x1024xf32, #tpu.memory_space<vmem>>, vector<1x1024xf32>
    %21 = vector.broadcast %20 : vector<1x1024xf32> to vector<4x1024xf32>
    %22 = arith.mulf %19, %21 : vector<4x1024xf32>
    %c12 = arith.constant 12 : index
    %c0_14 = arith.constant 0 : index
    %23 = vector.load %arg9[%c12, %c0_14] : memref<40x1024xf32, #tpu.memory_space<vmem>>, vector<4x1024xf32>
    tpu.vector_store %arg9[%c12, %c0_14], %22 {strides = array<i32>} : memref<40x1024xf32, #tpu.memory_space<vmem>>, vector<4x1024xf32>,
    %c16 = arith.constant 16 : index
    %c0_15 = arith.constant 0 : index
    %24 = vector.load %arg9[%c16, %c0_15] : memref<40x1024xf32, #tpu.memory_space<vmem>>, vector<4x1024xf32>
    tpu.vector_store %arg9[%c16, %c0_15], %1 {strides = array<i32>} : memref<40x1024xf32, #tpu.memory_space<vmem>>, vector<4x1024xf32>,
    %c1023_i32 = arith.constant 1023 : i32
    %25 = tpu.dynamic_rotate %1 by %c1023_i32 dim 1 : vector<4x1024xf32>, i32 -> vector<4x1024xf32>
    %c4_16 = arith.constant 4 : index
    %c0_17 = arith.constant 0 : index
    %26 = vector.load %arg5[%c4_16, %c0_17] : memref<8x1024xf32, #tpu.memory_space<vmem>>, vector<1x1024xf32>
    %27 = vector.broadcast %26 : vector<1x1024xf32> to vector<4x1024xf32>
    %28 = arith.mulf %25, %27 : vector<4x1024xf32>
    %c20 = arith.constant 20 : index
    %c0_18 = arith.constant 0 : index
    %29 = vector.load %arg9[%c20, %c0_18] : memref<40x1024xf32, #tpu.memory_space<vmem>>, vector<4x1024xf32>
    tpu.vector_store %arg9[%c20, %c0_18], %28 {strides = array<i32>} : memref<40x1024xf32, #tpu.memory_space<vmem>>, vector<4x1024xf32>,
    %c993_i32 = arith.constant 993 : i32
    %30 = tpu.dynamic_rotate %1 by %c993_i32 dim 1 : vector<4x1024xf32>, i32 -> vector<4x1024xf32>
    %c5 = arith.constant 5 : index
    %c0_19 = arith.constant 0 : index
    %31 = vector.load %arg5[%c5, %c0_19] : memref<8x1024xf32, #tpu.memory_space<vmem>>, vector<1x1024xf32>
    %32 = vector.broadcast %31 : vector<1x1024xf32> to vector<4x1024xf32>
    %33 = arith.mulf %30, %32 : vector<4x1024xf32>
    %c24 = arith.constant 24 : index
    %c0_20 = arith.constant 0 : index
    %34 = vector.load %arg9[%c24, %c0_20] : memref<40x1024xf32, #tpu.memory_space<vmem>>, vector<4x1024xf32>
    tpu.vector_store %arg9[%c24, %c0_20], %33 {strides = array<i32>} : memref<40x1024xf32, #tpu.memory_space<vmem>>, vector<4x1024xf32>,
    %c992_i32 = arith.constant 992 : i32
    %35 = tpu.dynamic_rotate %1 by %c992_i32 dim 1 : vector<4x1024xf32>, i32 -> vector<4x1024xf32>
    %c6 = arith.constant 6 : index
    %c0_21 = arith.constant 0 : index
    %36 = vector.load %arg5[%c6, %c0_21] : memref<8x1024xf32, #tpu.memory_space<vmem>>, vector<1x1024xf32>
    %37 = vector.broadcast %36 : vector<1x1024xf32> to vector<4x1024xf32>
    %38 = arith.mulf %35, %37 : vector<4x1024xf32>
    %c28 = arith.constant 28 : index
    %c0_22 = arith.constant 0 : index
    %39 = vector.load %arg9[%c28, %c0_22] : memref<40x1024xf32, #tpu.memory_space<vmem>>, vector<4x1024xf32>
    tpu.vector_store %arg9[%c28, %c0_22], %38 {strides = array<i32>} : memref<40x1024xf32, #tpu.memory_space<vmem>>, vector<4x1024xf32>,
    %c991_i32 = arith.constant 991 : i32
    %40 = tpu.dynamic_rotate %1 by %c991_i32 dim 1 : vector<4x1024xf32>, i32 -> vector<4x1024xf32>
    %c7 = arith.constant 7 : index
    %c0_23 = arith.constant 0 : index
    %41 = vector.load %arg5[%c7, %c0_23] : memref<8x1024xf32, #tpu.memory_space<vmem>>, vector<1x1024xf32>
    %42 = vector.broadcast %41 : vector<1x1024xf32> to vector<4x1024xf32>
    %43 = arith.mulf %40, %42 : vector<4x1024xf32>
    %c32 = arith.constant 32 : index
    %c0_24 = arith.constant 0 : index
    %44 = vector.load %arg9[%c32, %c0_24] : memref<40x1024xf32, #tpu.memory_space<vmem>>, vector<4x1024xf32>
    tpu.vector_store %arg9[%c32, %c0_24], %43 {strides = array<i32>} : memref<40x1024xf32, #tpu.memory_space<vmem>>, vector<4x1024xf32>,
    %c36 = arith.constant 36 : index
    %c0_25 = arith.constant 0 : index
    %45 = vector.load %arg9[%c36, %c0_25] : memref<40x1024xf32, #tpu.memory_space<vmem>>, vector<4x1024xf32>
    tpu.vector_store %arg9[%c36, %c0_25], %3 {strides = array<i32>} : memref<40x1024xf32, #tpu.memory_space<vmem>>, vector<4x1024xf32>,
    %c0_26 = arith.constant 0 : index
    %c0_27 = arith.constant 0 : index
    %46 = vector.load %arg3[%c0_26, %c0_27] : memref<16x40xf32, #tpu.memory_space<vmem>>, vector<16x40xf32>
    %c0_28 = arith.constant 0 : index
    %c0_29 = arith.constant 0 : index
    %47 = vector.load %arg9[%c0_28, %c0_29] : memref<40x1024xf32, #tpu.memory_space<vmem>>, vector<40x1024xf32>
    %cst = arith.constant dense<0.000000e+00> : vector<16x1024xf32>
    %48 = tpu.matmul %46, %47, %cst {dimension_numbers = #tpu.dot_dimension_numbers<[1], [0], [0], [1], [0, 0, 1, 1], [], []>} : vector<16x40xf32>, vector<40x1024xf32>, vector<16x1024xf32> -> vector<16x1024xf32>
    %49 = vector.extract_strided_slice %48 {offsets = [0, 0], sizes = [8, 1024], strides = [1, 1]} : vector<16x1024xf32> to vector<8x1024xf32>
    %c0_30 = arith.constant 0 : index
    %c0_31 = arith.constant 0 : index
    %50 = vector.load %arg6[%c0_30, %c0_31] : memref<8x3xf32, #tpu.memory_space<vmem>>, vector<8x1xf32>
    %51 = vector.broadcast %50 : vector<8x1xf32> to vector<8x1024xf32>
    %52 = arith.addf %49, %51 : vector<8x1024xf32>
    %53 = vector.extract_strided_slice %48 {offsets = [8, 0], sizes = [8, 1024], strides = [1, 1]} : vector<16x1024xf32> to vector<8x1024xf32>
    %c0_32 = arith.constant 0 : index
    %c1_33 = arith.constant 1 : index
    %54 = vector.load %arg6[%c0_32, %c1_33] : memref<8x3xf32, #tpu.memory_space<vmem>>, vector<8x1xf32>
    %55 = vector.broadcast %54 : vector<8x1xf32> to vector<8x1024xf32>
    %56 = arith.addf %53, %55 : vector<8x1024xf32>
    %cst_34 = arith.constant 0.000000e+00 : f32
    %57 = vector.broadcast %cst_34 : f32 to vector<8x1024xf32>
    %58 = arith.cmpf oge, %52, %57 : vector<8x1024xf32>
    %cst_35 = arith.constant 2.000000e-01 : f32
    %59 = vector.broadcast %cst_35 : f32 to vector<8x1024xf32>
    %60 = arith.mulf %59, %52 : vector<8x1024xf32>
    %61 = arith.select %58, %52, %60 : vector<8x1024xi1>, vector<8x1024xf32>
    %c0_36 = arith.constant 0 : index
    %c0_37 = arith.constant 0 : index
    %c0_38 = arith.constant 0 : index
    %62 = vector.load %arg8[%c0_36, %c0_37, %c0_38] : memref<1x8x1024xf32, #tpu.memory_space<vmem>>, vector<1x8x1024xf32>
    %63 = vector.shape_cast %62 : vector<1x8x1024xf32> to vector<8x1024xf32>
    %64 = vector.shape_cast %61 : vector<8x1024xf32> to vector<1x8x1024xf32>
    tpu.vector_store %arg8[%c0_36, %c0_37, %c0_38], %64 {strides = array<i32>} : memref<1x8x1024xf32, #tpu.memory_space<vmem>>, vector<1x8x1024xf32>,
    %c33_i32_39 = arith.constant 33 : i32
    %65 = tpu.dynamic_rotate %61 by %c33_i32_39 dim 1 : vector<8x1024xf32>, i32 -> vector<8x1024xf32>
    %c0_40 = arith.constant 0 : index
    %c0_41 = arith.constant 0 : index
    %66 = vector.load %arg5[%c0_40, %c0_41] : memref<8x1024xf32, #tpu.memory_space<vmem>>, vector<1x1024xf32>
    %67 = vector.broadcast %66 : vector<1x1024xf32> to vector<8x1024xf32>
    %68 = arith.mulf %65, %67 : vector<8x1024xf32>
    %c0_42 = arith.constant 0 : index
    %c0_43 = arith.constant 0 : index
    %69 = vector.load %arg10[%c0_42, %c0_43] : memref<72x1024xf32, #tpu.memory_space<vmem>>, vector<8x1024xf32>
    tpu.vector_store %arg10[%c0_42, %c0_43], %68 {strides = array<i32>} : memref<72x1024xf32, #tpu.memory_space<vmem>>, vector<8x1024xf32>,
    %c32_i32_44 = arith.constant 32 : i32
    %70 = tpu.dynamic_rotate %61 by %c32_i32_44 dim 1 : vector<8x1024xf32>, i32 -> vector<8x1024xf32>
    %c1_45 = arith.constant 1 : index
    %c0_46 = arith.constant 0 : index
    %71 = vector.load %arg5[%c1_45, %c0_46] : memref<8x1024xf32, #tpu.memory_space<vmem>>, vector<1x1024xf32>
    %72 = vector.broadcast %71 : vector<1x1024xf32> to vector<8x1024xf32>
    %73 = arith.mulf %70, %72 : vector<8x1024xf32>
    %c8_47 = arith.constant 8 : index
    %c0_48 = arith.constant 0 : index
    %74 = vector.load %arg10[%c8_47, %c0_48] : memref<72x1024xf32, #tpu.memory_space<vmem>>, vector<8x1024xf32>
    tpu.vector_store %arg10[%c8_47, %c0_48], %73 {strides = array<i32>} : memref<72x1024xf32, #tpu.memory_space<vmem>>, vector<8x1024xf32>,
    %c31_i32_49 = arith.constant 31 : i32
    %75 = tpu.dynamic_rotate %61 by %c31_i32_49 dim 1 : vector<8x1024xf32>, i32 -> vector<8x1024xf32>
    %c2_50 = arith.constant 2 : index
    %c0_51 = arith.constant 0 : index
    %76 = vector.load %arg5[%c2_50, %c0_51] : memref<8x1024xf32, #tpu.memory_space<vmem>>, vector<1x1024xf32>
    %77 = vector.broadcast %76 : vector<1x1024xf32> to vector<8x1024xf32>
    %78 = arith.mulf %75, %77 : vector<8x1024xf32>
    %c16_52 = arith.constant 16 : index
    %c0_53 = arith.constant 0 : index
    %79 = vector.load %arg10[%c16_52, %c0_53] : memref<72x1024xf32, #tpu.memory_space<vmem>>, vector<8x1024xf32>
    tpu.vector_store %arg10[%c16_52, %c0_53], %78 {strides = array<i32>} : memref<72x1024xf32, #tpu.memory_space<vmem>>, vector<8x1024xf32>,
    %c1_i32_54 = arith.constant 1 : i32
    %80 = tpu.dynamic_rotate %61 by %c1_i32_54 dim 1 : vector<8x1024xf32>, i32 -> vector<8x1024xf32>
    %c3_55 = arith.constant 3 : index
    %c0_56 = arith.constant 0 : index
    %81 = vector.load %arg5[%c3_55, %c0_56] : memref<8x1024xf32, #tpu.memory_space<vmem>>, vector<1x1024xf32>
    %82 = vector.broadcast %81 : vector<1x1024xf32> to vector<8x1024xf32>
    %83 = arith.mulf %80, %82 : vector<8x1024xf32>
    %c24_57 = arith.constant 24 : index
    %c0_58 = arith.constant 0 : index
    %84 = vector.load %arg10[%c24_57, %c0_58] : memref<72x1024xf32, #tpu.memory_space<vmem>>, vector<8x1024xf32>
    tpu.vector_store %arg10[%c24_57, %c0_58], %83 {strides = array<i32>} : memref<72x1024xf32, #tpu.memory_space<vmem>>, vector<8x1024xf32>,
    %c32_59 = arith.constant 32 : index
    %c0_60 = arith.constant 0 : index
    %85 = vector.load %arg10[%c32_59, %c0_60] : memref<72x1024xf32, #tpu.memory_space<vmem>>, vector<8x1024xf32>
    tpu.vector_store %arg10[%c32_59, %c0_60], %61 {strides = array<i32>} : memref<72x1024xf32, #tpu.memory_space<vmem>>, vector<8x1024xf32>,
    %c1023_i32_61 = arith.constant 1023 : i32
    %86 = tpu.dynamic_rotate %61 by %c1023_i32_61 dim 1 : vector<8x1024xf32>, i32 -> vector<8x1024xf32>
    %c4_62 = arith.constant 4 : index
    %c0_63 = arith.constant 0 : index
    %87 = vector.load %arg5[%c4_62, %c0_63] : memref<8x1024xf32, #tpu.memory_space<vmem>>, vector<1x1024xf32>
    %88 = vector.broadcast %87 : vector<1x1024xf32> to vector<8x1024xf32>
    %89 = arith.mulf %86, %88 : vector<8x1024xf32>
    %c40 = arith.constant 40 : index
    %c0_64 = arith.constant 0 : index
    %90 = vector.load %arg10[%c40, %c0_64] : memref<72x1024xf32, #tpu.memory_space<vmem>>, vector<8x1024xf32>
    tpu.vector_store %arg10[%c40, %c0_64], %89 {strides = array<i32>} : memref<72x1024xf32, #tpu.memory_space<vmem>>, vector<8x1024xf32>,
    %c993_i32_65 = arith.constant 993 : i32
    %91 = tpu.dynamic_rotate %61 by %c993_i32_65 dim 1 : vector<8x1024xf32>, i32 -> vector<8x1024xf32>
    %c5_66 = arith.constant 5 : index
    %c0_67 = arith.constant 0 : index
    %92 = vector.load %arg5[%c5_66, %c0_67] : memref<8x1024xf32, #tpu.memory_space<vmem>>, vector<1x1024xf32>
    %93 = vector.broadcast %92 : vector<1x1024xf32> to vector<8x1024xf32>
    %94 = arith.mulf %91, %93 : vector<8x1024xf32>
    %c48 = arith.constant 48 : index
    %c0_68 = arith.constant 0 : index
    %95 = vector.load %arg10[%c48, %c0_68] : memref<72x1024xf32, #tpu.memory_space<vmem>>, vector<8x1024xf32>
    tpu.vector_store %arg10[%c48, %c0_68], %94 {strides = array<i32>} : memref<72x1024xf32, #tpu.memory_space<vmem>>, vector<8x1024xf32>,
    %c992_i32_69 = arith.constant 992 : i32
    %96 = tpu.dynamic_rotate %61 by %c992_i32_69 dim 1 : vector<8x1024xf32>, i32 -> vector<8x1024xf32>
    %c6_70 = arith.constant 6 : index
    %c0_71 = arith.constant 0 : index
    %97 = vector.load %arg5[%c6_70, %c0_71] : memref<8x1024xf32, #tpu.memory_space<vmem>>, vector<1x1024xf32>
    %98 = vector.broadcast %97 : vector<1x1024xf32> to vector<8x1024xf32>
    %99 = arith.mulf %96, %98 : vector<8x1024xf32>
    %c56 = arith.constant 56 : index
    %c0_72 = arith.constant 0 : index
    %100 = vector.load %arg10[%c56, %c0_72] : memref<72x1024xf32, #tpu.memory_space<vmem>>, vector<8x1024xf32>
    tpu.vector_store %arg10[%c56, %c0_72], %99 {strides = array<i32>} : memref<72x1024xf32, #tpu.memory_space<vmem>>, vector<8x1024xf32>,
    %c991_i32_73 = arith.constant 991 : i32
    %101 = tpu.dynamic_rotate %61 by %c991_i32_73 dim 1 : vector<8x1024xf32>, i32 -> vector<8x1024xf32>
    %c7_74 = arith.constant 7 : index
    %c0_75 = arith.constant 0 : index
    %102 = vector.load %arg5[%c7_74, %c0_75] : memref<8x1024xf32, #tpu.memory_space<vmem>>, vector<1x1024xf32>
    %103 = vector.broadcast %102 : vector<1x1024xf32> to vector<8x1024xf32>
    %104 = arith.mulf %101, %103 : vector<8x1024xf32>
    %c64 = arith.constant 64 : index
    %c0_76 = arith.constant 0 : index
    %105 = vector.load %arg10[%c64, %c0_76] : memref<72x1024xf32, #tpu.memory_space<vmem>>, vector<8x1024xf32>
    tpu.vector_store %arg10[%c64, %c0_76], %104 {strides = array<i32>} : memref<72x1024xf32, #tpu.memory_space<vmem>>, vector<8x1024xf32>,
    %c0_77 = arith.constant 0 : index
    %c0_78 = arith.constant 0 : index
    %106 = vector.load %arg4[%c0_77, %c0_78] : memref<8x72xf32, #tpu.memory_space<vmem>>, vector<8x72xf32>
    %c0_79 = arith.constant 0 : index
    %c0_80 = arith.constant 0 : index
    %107 = vector.load %arg10[%c0_79, %c0_80] : memref<72x1024xf32, #tpu.memory_space<vmem>>, vector<72x1024xf32>
    %cst_81 = arith.constant dense<0.000000e+00> : vector<8x1024xf32>
    %108 = tpu.matmul %106, %107, %cst_81 {dimension_numbers = #tpu.dot_dimension_numbers<[1], [0], [0], [1], [0, 0, 1, 1], [], []>} : vector<8x72xf32>, vector<72x1024xf32>, vector<8x1024xf32> -> vector<8x1024xf32>
    %c0_82 = arith.constant 0 : index
    %c2_83 = arith.constant 2 : index
    %109 = vector.load %arg6[%c0_82, %c2_83] : memref<8x3xf32, #tpu.memory_space<vmem>>, vector<8x1xf32>
    %110 = vector.broadcast %109 : vector<8x1xf32> to vector<8x1024xf32>
    %111 = arith.addf %108, %110 : vector<8x1024xf32>
    %112 = arith.addf %111, %56 : vector<8x1024xf32>
    %c0_84 = arith.constant 0 : index
    %c0_85 = arith.constant 0 : index
    %c0_86 = arith.constant 0 : index
    %113 = vector.load %arg7[%c0_84, %c0_85, %c0_86] : memref<1x8x1024xf32, #tpu.memory_space<vmem>>, vector<1x8x1024xf32>
    %114 = vector.shape_cast %113 : vector<1x8x1024xf32> to vector<8x1024xf32>
    %115 = vector.shape_cast %112 : vector<8x1024xf32> to vector<1x8x1024xf32>
    tpu.vector_store %arg7[%c0_84, %c0_85, %c0_86], %115 {strides = array<i32>} : memref<1x8x1024xf32, #tpu.memory_space<vmem>>, vector<1x8x1024xf32>,
    return
  }
  func.func @transform_0(%arg0: i32) -> (i32, i32, i32) {
    %c0_i32 = arith.constant 0 : i32
    %c0_i32_0 = arith.constant 0 : i32
    %c0_i32_1 = arith.constant 0 : i32
    return %arg0, %c0_i32, %c0_i32_0 : i32, i32, i32
  }
  func.func @transform_1(%arg0: i32) -> (i32, i32, i32) {
    %c0_i32 = arith.constant 0 : i32
    %c0_i32_0 = arith.constant 0 : i32
    %c0_i32_1 = arith.constant 0 : i32
    return %arg0, %c0_i32, %c0_i32_0 : i32, i32, i32
  }
  func.func @transform_2(%arg0: i32) -> (i32, i32) {
    %c0_i32 = arith.constant 0 : i32
    %c0_i32_0 = arith.constant 0 : i32
    %c0_i32_1 = arith.constant 0 : i32
    return %c0_i32, %c0_i32_0 : i32, i32
  }
  func.func @transform_3(%arg0: i32) -> (i32, i32) {
    %c0_i32 = arith.constant 0 : i32
    %c0_i32_0 = arith.constant 0 : i32
    %c0_i32_1 = arith.constant 0 : i32
    return %c0_i32, %c0_i32_0 : i32, i32
  }
  func.func @transform_4(%arg0: i32) -> (i32, i32) {
    %c0_i32 = arith.constant 0 : i32
    %c0_i32_0 = arith.constant 0 : i32
    %c0_i32_1 = arith.constant 0 : i32
    return %c0_i32, %c0_i32_0 : i32, i32
  }
  func.func @transform_5(%arg0: i32) -> (i32, i32) {
    %c0_i32 = arith.constant 0 : i32
    %c0_i32_0 = arith.constant 0 : i32
    %c0_i32_1 = arith.constant 0 : i32
    return %c0_i32, %c0_i32_0 : i32, i32
  }
  func.func @transform_6(%arg0: i32) -> (i32, i32, i32) {
    %c0_i32 = arith.constant 0 : i32
    %c0_i32_0 = arith.constant 0 : i32
    %c0_i32_1 = arith.constant 0 : i32
    return %arg0, %c0_i32, %c0_i32_0 : i32, i32, i32
  }
  func.func @transform_7(%arg0: i32) -> (i32, i32, i32) {
    %c0_i32 = arith.constant 0 : i32
    %c0_i32_0 = arith.constant 0 : i32
    %c0_i32_1 = arith.constant 0 : i32
    return %arg0, %c0_i32, %c0_i32_0 : i32, i32, i32
  }
}

</mosaic_0001>

<bundles_post_ra>
// kernel: autogan_gen_block.1
= control target key start
LH: loop header
LB: loop body
LE: loop exit
PB: predicated region body
PF: predicated region fallthrough
CT: control target
= control target key end

     0   :  { %s2995_s24 = smov 0   ;;  %s4371_s0 = inlined_call_operand.vmem [shape: f32[2,4,1024], index: 0, kind: input, shape index: {}]   ;;  %s4372_s1 = inlined_call_operand.vmem [shape: f32[2,4,1024], index: 1, kind: input, shape index: {}]   ;;  %s4373_s2 = inlined_call_operand.vmem [shape: f32[16,40], index: 2, kind: input, shape index: {}]   ;;  %s4374_s3 = inlined_call_operand.vmem [shape: f32[8,72], index: 3, kind: input, shape index: {}]   ;;  %s4375_s4 = inlined_call_operand.vmem [shape: f32[8,1024], index: 4, kind: input, shape index: {}]   ;;  %s4376_s5 = inlined_call_operand.vmem [shape: f32[8,3], index: 5, kind: input, shape index: {}]   ;;  %s4377_s6 = inlined_call_operand.vmem [shape: f32[2,8,1024], index: 6, kind: output, shape index: {0}]   ;;  %s4378_s7 = inlined_call_operand.vmem [shape: f32[2,8,1024], index: 7, kind: output, shape index: {1}]  }
   0x1 LB: > { %s2723_s25 = sadd.s32 4294967295, %s2941_s24   ;;  %p2727_p0 = scmp.ge.s32.totalorder %s2941_s24, 1  ;;  %s2941_s24 = sphi %s2995_s24, %s18_s24  }
   0x2   : > { %p250_p1 = scmp.lt.s32.totalorder %s2941_s24, 3 }
   0x4   : > { %p251_p2 = pnand %p2727_p0, %p250_p1 }
   0x6   : > { %254 = sbr.rel (%p251_p2) target bundleno = 941 (0x3ad), region = 44 }
   0xd   : > { %p292_p3 = scmp.lt.s32.totalorder %s2723_s25, 1  ;;  %s2943_s10 = smov 1   ;;  %v4379_v15 = vmov 0.0   ;;  %v348_v17 = vlaneseq  ;;  %v2740_v19 = vld [vmem:[%s4375_s4 + $0x3] ss:$8 sm:$0xf] }
   0xe   : > { %s2944_s11 = smov 32   ;;  %s2945_s12 = smov 33   ;;  %1335 = vmatprep.mubr.f32.mxu1 %v4379_v15  ;;  %1258 = vmatprep.mubr.f32.mxu0 %v4379_v15  ;;  %v2741_v20 = vld [vmem:[%s4375_s4 + $0x3] ss:$8 sm:$0xf0]  ;;  %vm1187_vm8 = vcmask 326656  }
   0xf   : > { %s4434_s25 = smov (!%p292_p3, %s2723_s25), 1  ;;  %s2946_s13 = smov 31   ;;  %v3155_v18 = vshrl.u32 %v348_v17, 7  ;;  %v2736_v21 = vld [vmem:[%s4375_s4 + $0x1] ss:$8 sm:$0xf]  ;;  %v3178_v25 = vor.u32 %v2741_v20, %v2740_v19 }
  0x10   : > { %s2778_s26 = sshll.u32 %s4434_s25, 5  ;;  %s2947_s14 = smov 127   ;;  %v2737_v22 = vld [vmem:[%s4375_s4 + $0x1] ss:$8 sm:$0xf0]  ;;  %v3173_v23 = vand.u32 127, %v348_v17 }
  0x11   : > { %s296_s29 = scalar_lea.vmem %s4371_s0, %s2778_s26  ;;  %s301_s9 = scalar_lea.vmem %s4372_s1, %s2778_s26  ;;  %v3176_v24 = vsub.s32 3, %v3155_v18  ;;  %v3182_v26 = vor.u32 %v2737_v22, %v2736_v21  ;;  %v3190_v30 = vsub.s32 2, %v3155_v18  ;;  %v359_v33 = vld [vmem:[%s4375_s4] ss:$8 sm:$0xf] }
  0x12   : > { %v3012_v0 = vld [vmem:[%s296_s29 + $0x8] sm:$0xff]  ;;  %v3014_v1 = vld [vmem:[%s296_s29 + $0x18] sm:$0xff]  ;;  %v3016_v2 = vld [vmem:[%s301_s9] sm:$0xff]  ;;  %s2948_s15 = smov 96   ;;  %s2949_s16 = smov 97   ;;  %vm631_vm0 = vcmp.lt.s32.totalorder %v3173_v23, 1 }
  0x13   : > { %v3018_v3 = vld [vmem:[%s301_s9 + $0x8] sm:$0xff]  ;;  %v318_v4 = vld [vmem:[%s301_s9 + $0x10] sm:$0xff]  ;;  %v319_v5 = vld [vmem:[%s301_s9 + $0x18] sm:$0xff]  ;;  %619 = vrot.lane.b32.xlu1 %v3012_v0, %s2943_s10  ;;  %727 = vst [vmem:[#allocation2 + $0x90] sm:$0xf] %v3012_v0  ;;  %v325_v6 = vcombine.high %v3012_v0, %v3012_v0  ;;  %v3029_v7 = vcombine.high %v3014_v1, %v3014_v1  ;;  %s2950_s17 = smov 95   ;;  %v1129_v16 = vcombine.low %v3016_v2, %v3016_v2 }
  0x14   : > { %731 = vst [vmem:[#allocation2 + $0xb0] sm:$0xf] %v3014_v1  ;;  %1138 = vst [vmem:[#allocation2 + $0x108] sm:$0xf0] %v3016_v2  ;;  %v1131_v8 = vcombine.low %v318_v4, %v318_v4  ;;  %v1132_v9 = vcombine.low %v319_v5, %v319_v5  ;;  %v3031_v10 = vld [vmem:[%s296_s29] sm:$0xff]  ;;  %423 = vrot.lane.b32.xlu0 %v3012_v0, %s2944_s11  ;;  %v3036_v11 = vld [vmem:[%s296_s29 + $0x10] sm:$0xff]  ;;  %v1130_v14 = vcombine.low %v3018_v3, %v3018_v3 }
  0x15   : > { %1140 = vst [vmem:[#allocation2 + $0x118] sm:$0xf0] %v3018_v3  ;;  %1142 = vst [vmem:[#allocation2 + $0x128] sm:$0xf0] %v318_v4  ;;  %v3041_v12 = vcombine.high %v3031_v10, %v3031_v10  ;;  %v3047_v13 = vcombine.high %v3036_v11, %v3036_v11  ;;  %v660_v29 = vrot.slane %v3178_v25, %v3176_v24  ;;  %vm435_vm1 = vcmp.lt.s32.totalorder %v3173_v23, 32  ;;  %v1502_v2 = vld [vmem:[%s4376_s5] sm:$0xff] }
  0x16   : > { %1144 = vst [vmem:[#allocation2 + $0x138] sm:$0xf0] %v319_v5  ;;  %725 = vst [vmem:[#allocation2 + $0x80] sm:$0xf] %v3031_v10  ;;  %v464_v31 = vrot.slane %v3182_v26, %v3176_v24  ;;  %v656_v39 = vrot.slane %v3178_v25, %v3190_v30  ;;  %v460_v41 = vrot.slane %v3182_v26, %v3190_v30  ;;  %vm350_vm2 = vcmp.lt.s32.totalorder %v3173_v23, 33  ;;  %s2780_s9 = sshll.u32 %s4434_s25, 6 }
  0x17   : > { %728 = vst [vmem:[#allocation2 + $0x98] sm:$0xf] %v325_v6  ;;  %729 = vst [vmem:[#allocation2 + $0xa0] sm:$0xf] %v3036_v11  ;;  %621 = vrot.lane.b32.xlu1 %v325_v6, %s2943_s10  ;;  %vm545_vm3 = vcmp.lt.s32.totalorder %v3173_v23, 31  ;;  %v2952_v5 = vmov 0   ;;  %s3664_s20 = scalar_lea.vmem %s4378_s7, %s2780_s9  ;;  %s306_s19 = scalar_lea.vmem %s4377_s6, %s2780_s9 }
  0x18   : > { %732 = vst [vmem:[#allocation2 + $0xb8] sm:$0xf] %v3029_v7  ;;  %1141 = vst [vmem:[#allocation2 + $0x120] sm:$0xf0] %v1131_v8  ;;  %425 = vrot.lane.b32.xlu0 %v325_v6, %s2944_s11  ;;  %vm749_vm4 = vcmp.lt.s32.totalorder %v3173_v23, 127  ;;  %vm945_vm5 = vcmp.lt.s32.totalorder %v3173_v23, 96 }
  0x19   : > { %1143 = vst [vmem:[#allocation2 + $0x130] sm:$0xf0] %v1132_v9  ;;  %726 = vst [vmem:[#allocation2 + $0x88] sm:$0xf] %v3041_v12  ;;  %2922 = vset.pattern.permute.xlu0 %v2952_v5  ;;  %vm859_vm6 = vcmp.lt.s32.totalorder %v3173_v23, 97  ;;  %vm1055_vm7 = vcmp.lt.s32.totalorder %v3173_v23, 95 }
  0x1a   : > { %730 = vst [vmem:[#allocation2 + $0xa8] sm:$0xf] %v3047_v13  ;;  %1139 = vst [vmem:[#allocation2 + $0x110] sm:$0xf0] %v1130_v14 }
  0x1b   : > { %617 = vrot.lane.b32.xlu1 %v3041_v12, %s2943_s10  ;;  %1137 = vst [vmem:[#allocation2 + $0x100] sm:$0xf0] %v1129_v16  ;;  %v360_v34 = vld [vmem:[%s4375_s4] ss:$8 sm:$0xf0] }
  0x1c   : > { %421 = vrot.lane.b32.xlu0 %v3041_v12, %s2944_s11  ;;  %v3221_v42 = vor.u32 %v360_v34, %v359_v33  ;;  %v2738_v43 = vld [vmem:[%s4375_s4 + $0x2] ss:$8 sm:$0xf]  ;;  %v2742_v63 = vld [vmem:[%s4375_s4 + $0x4] ss:$8 sm:$0xf] }
  0x1d   : > { %v2739_v46 = vld [vmem:[%s4375_s4 + $0x2] ss:$8 sm:$0xf0] }
  0x1e   : > { %v378_v53 = vrot.slane %v3221_v42, %v3176_v24  ;;  %v3246_v54 = vor.u32 %v2739_v46, %v2738_v43 }
  0x1f   : > { %338 = vrot.lane.b32.xlu1 %v325_v6, %s2945_s12 }
  0x20   : > { %336 = vrot.lane.b32.xlu0 %v3012_v0, %s2945_s12  ;;  %v574_v61 = vrot.slane %v3246_v54, %v3176_v24  ;;  %v570_v4 = vrot.slane %v3246_v54, %v3190_v30 }
  0x23   : > { %535 = vrot.lane.b32.xlu1 %v325_v6, %s2946_s13 }
  0x24   : > { %533 = vrot.lane.b32.xlu0 %v3012_v0, %s2946_s13 }
  0x27   : > { %531 = vrot.lane.b32.xlu1 %v3041_v12, %s2946_s13 }
  0x28   : > { %334 = vrot.lane.b32.xlu0 %v3041_v12, %s2945_s12 }
  0x2b   : > { %741 = vrot.lane.b32.xlu1 %v3036_v11, %s2947_s14 }
  0x2c   : > { %739 = vrot.lane.b32.xlu0 %v325_v6, %s2947_s14 }
  0x2f   : > { %937 = vrot.lane.b32.xlu1 %v3036_v11, %s2948_s15 }
  0x30   : > { %935 = vrot.lane.b32.xlu0 %v325_v6, %s2948_s15 }
  0x33   : > { %933 = vrot.lane.b32.xlu1 %v3012_v0, %s2948_s15 }
  0x34   : > { %737 = vrot.lane.b32.xlu0 %v3012_v0, %s2947_s14 }
  0x37   : > { %851 = vrot.lane.b32.xlu1 %v3036_v11, %s2949_s16 }
  0x38   : > { %849 = vrot.lane.b32.xlu0 %v325_v6, %s2949_s16 }
  0x3b   : > { %419 = vrot.lane.b32.xlu1 %v3031_v10, %s2944_s11 }
  0x3c   : > { %847 = vrot.lane.b32.xlu0 %v3012_v0, %s2949_s16 }
  0x3f   : > { %433 = vrot.lane.b32.xlu1 %v3029_v7, %s2944_s11 }
  0x40   : > { %615 = vrot.lane.b32.xlu0 %v3031_v10, %s2943_s10 }
  0x43   : > { %332 = vrot.lane.b32.xlu1 %v3031_v10, %s2945_s12 }
  0x44   : > { %629 = vrot.lane.b32.xlu0 %v3029_v7, %s2943_s10 }
  0x47   : > { %529 = vrot.lane.b32.xlu1 %v3031_v10, %s2946_s13 }
  0x48   : > { %431 = vrot.lane.b32.xlu0 %v3014_v1, %s2944_s11 }
  0x4b   : > { %346 = vrot.lane.b32.xlu1 %v3029_v7, %s2945_s12 }
  0x4c   : > { %627 = vrot.lane.b32.xlu0 %v3014_v1, %s2943_s10 }
  0x4f   : > { %543 = vrot.lane.b32.xlu1 %v3029_v7, %s2946_s13 }
  0x50   : > { %429 = vrot.lane.b32.xlu0 %v3047_v13, %s2944_s11 }
  0x53   : > { %344 = vrot.lane.b32.xlu1 %v3014_v1, %s2945_s12 }
  0x54   : > { %625 = vrot.lane.b32.xlu0 %v3047_v13, %s2943_s10 }
  0x57   : > { %735 = vrot.lane.b32.xlu1 %v3041_v12, %s2947_s14 }
  0x58   : > { %541 = vrot.lane.b32.xlu0 %v3014_v1, %s2946_s13 }
  0x5b   : > { %1045 = vrot.lane.b32.xlu1 %v325_v6, %s2950_s17 }
  0x5c   : > { %931 = vrot.lane.b32.xlu0 %v3041_v12, %s2948_s15 }
  0x5f   : > { %342 = vrot.lane.b32.xlu1 %v3047_v13, %s2945_s12 }
  0x60   : > { %1047 = vrot.lane.b32.xlu0 %v3036_v11, %s2950_s17 }
  0x63   : > { %733 = vrot.lane.b32.xlu1 %v3031_v10, %s2947_s14 }
  0x64   : > { %539 = vrot.lane.b32.xlu0 %v3047_v13, %s2946_s13 }
  0x67   : > { %1043 = vrot.lane.b32.xlu1 %v3012_v0, %s2950_s17  ;;  %v2743_v0 = vld [vmem:[%s4375_s4 + $0x4] ss:$8 sm:$0xf0] }
  0x68   : > { %929 = vrot.lane.b32.xlu0 %v3031_v10, %s2948_s15  ;;  %v3274_v8 = vor.u32 %v2743_v0, %v2742_v63 }
  0x6a   : > { %v778_v19 = vrot.slane %v3274_v8, %v3176_v24  ;;  %v774_v46 = vrot.slane %v3274_v8, %v3190_v30 }
  0x6b   : > { %845 = vrot.lane.b32.xlu1 %v3041_v12, %s2949_s16 }
  0x6c   : > { %747 = vrot.lane.b32.xlu0 %v3029_v7, %s2947_s14 }
  0x6f   : > { %745 = vrot.lane.b32.xlu1 %v3014_v1, %s2947_s14 }
  0x70   : > { %943 = vrot.lane.b32.xlu0 %v3029_v7, %s2948_s15 }
  0x73   : > { %941 = vrot.lane.b32.xlu1 %v3014_v1, %s2948_s15 }
  0x74   : > { %843 = vrot.lane.b32.xlu0 %v3031_v10, %s2949_s16 }
  0x77   : > { %855 = vrot.lane.b32.xlu1 %v3014_v1, %s2949_s16 }
  0x78   : > { %857 = vrot.lane.b32.xlu0 %v3029_v7, %s2949_s16 }
  0x7b   : > { %623 = vrot.lane.b32.xlu1 %v3036_v11, %s2943_s10 }
  0x7c   : > { %427 = vrot.lane.b32.xlu0 %v3036_v11, %s2944_s11 }
  0x7f   : > { %537 = vrot.lane.b32.xlu1 %v3036_v11, %s2946_s13 }
  0x80   : > { %340 = vrot.lane.b32.xlu0 %v3036_v11, %s2945_s12  ;;  %v2747_v11 = vld [vmem:[%s4375_s4 + $0x6] ss:$8 sm:$0xf0] }
  0x83   : > { %1039 = vrot.lane.b32.xlu1 %v3031_v10, %s2950_s17  ;;  %v2746_v10 = vld [vmem:[%s4375_s4 + $0x6] ss:$8 sm:$0xf] }
  0x84   : > { %1041 = vrot.lane.b32.xlu0 %v3041_v12, %s2950_s17  ;;  %v3295_v20 = vor.u32 %v2747_v11, %v2746_v10 }
  0x85   : > { %v620_v27 = vpop.permute.xlu1 %619 }
  0x86   : > { %v424_v28 = vpop.permute.xlu0 %423  ;;  %v970_v43 = vrot.slane %v3295_v20, %v3190_v30 }
  0x87   : > { %939 = vrot.lane.b32.xlu1 %v3047_v13, %s2948_s15 }
  0x88   : > { %743 = vrot.lane.b32.xlu0 %v3047_v13, %s2947_s14 }
  0x89   : > { %v3197_v32 = vpop.permute.xlu1 %621 }
  0x8a   : > { %v636_v35 = vsel %vm631_vm0, %v620_v27, %v3197_v32  ;;  %v3208_v36 = vpop.permute.xlu0 %425 }
  0x8b   : > { %v688_v37 = vmul.f32 %v660_v29, %v636_v35  ;;  %v440_v38 = vsel %vm435_vm1, %v424_v28, %v3208_v36  ;;  %1051 = vrot.lane.b32.xlu1 %v3014_v1, %s2950_s17  ;;  %v974_v29 = vrot.slane %v3295_v20, %v3176_v24 }
  0x8c   : > { %v492_v40 = vmul.f32 %v464_v31, %v440_v38  ;;  %1053 = vrot.lane.b32.xlu0 %v3029_v7, %s2950_s17  ;;  %v374_v7 = vrot.slane %v3221_v42, %v3190_v30  ;;  %v2744_v31 = vld [vmem:[%s4375_s4 + $0x5] ss:$8 sm:$0xf] }
  0x8d   : > { %v704_v44 = vrot.slane %v688_v37, 4  ;;  %v3226_v45 = vpop.permute.xlu1 %617  ;;  %v2745_v37 = vld [vmem:[%s4375_s4 + $0x5] ss:$8 sm:$0xf0] }
  0x8e   : > { %v508_v47 = vrot.slane %v492_v40, 4  ;;  %v637_v48 = vsel %vm631_vm0, %v3226_v45, %v620_v27  ;;  %v3234_v49 = vpop.permute.xlu0 %421 }
  0x8f   : > { %720 = vst [vmem:[#allocation2 + $0x58] sm:$0xf0] %v704_v44  ;;  %v687_v50 = vmul.f32 %v656_v39, %v637_v48  ;;  %v441_v51 = vsel %vm435_vm1, %v3234_v49, %v424_v28  ;;  %1049 = vrot.lane.b32.xlu1 %v3047_v13, %s2950_s17  ;;  %v3320_v48 = vor.u32 %v2745_v37, %v2744_v31 }
  0x90   : > { %524 = vst [vmem:[#allocation2 + $0x18] sm:$0xf0] %v508_v47  ;;  %v491_v52 = vmul.f32 %v460_v41, %v441_v51  ;;  %853 = vrot.lane.b32.xlu0 %v3047_v13, %s2949_s16 }
  0x91   : > { %v703_v55 = vrot.slane %v687_v50, 4  ;;  %v3248_v56 = vpop.permute.xlu1 %338  ;;  %v888_v63 = vrot.slane %v3320_v48, %v3176_v24  ;;  %v884_v10 = vrot.slane %v3320_v48, %v3190_v30 }
  0x92   : > { %v507_v57 = vrot.slane %v491_v52, 4  ;;  %v337_v58 = vpop.permute.xlu0 %336 }
  0x93   : > { %719 = vst [vmem:[#allocation2 + $0x50] sm:$0xf0] %v703_v55  ;;  %v355_v59 = vsel %vm350_vm2, %v337_v58, %v3248_v56 }
  0x94   : > { %523 = vst [vmem:[#allocation2 + $0x10] sm:$0xf0] %v507_v57  ;;  %v406_v60 = vmul.f32 %v378_v53, %v355_v59  ;;  %1505 = vperm.xlu0 %2922, %v1502_v2  }
  0x95   : > { %v3256_v62 = vpop.permute.xlu1 %535 }
  0x96   : > { %414 = vst [vmem:[#allocation2 + $0x18] sm:$0xf] %v406_v60  ;;  %v534_v1 = vpop.permute.xlu0 %533  ;;  %v3333_v60 = vsub.s32 1, %v3155_v18 }
  0x97   : > { %v550_v3 = vsel %vm545_vm3, %v534_v1, %v3256_v62 }
  0x98   : > { %v602_v6 = vmul.f32 %v574_v61, %v550_v3  ;;  %v456_v5 = vrot.slane %v3182_v26, %v3333_v60  ;;  %v370_v37 = vrot.slane %v3221_v42, %v3333_v60 }
  0x99   : > { %v3276_v9 = vpop.permute.xlu1 %531 }
  0x9a   : > { %610 = vst [vmem:[#allocation2 + $0x58] sm:$0xf] %v602_v6  ;;  %v551_v12 = vsel %vm545_vm3, %v3276_v9, %v534_v1  ;;  %v3287_v13 = vpop.permute.xlu0 %334  ;;  %v3346_v6 = vsub.s32 0, %v3155_v18 }
  0x9b   : > { %v601_v14 = vmul.f32 %v570_v4, %v551_v12  ;;  %v356_v16 = vsel %vm350_vm2, %v3287_v13, %v337_v58 }
  0x9c   : > { %v405_v17 = vmul.f32 %v374_v7, %v356_v16 }
  0x9d   : > { %609 = vst [vmem:[#allocation2 + $0x50] sm:$0xf] %v601_v14  ;;  %v3297_v21 = vpop.permute.xlu1 %741  ;;  %v1150_v34 = vld [vmem:[#allocation2 + $0x18] sm:$0xff] }
  0x9e   : > { %413 = vst [vmem:[#allocation2 + $0x10] sm:$0xf] %v405_v17  ;;  %v740_v22 = vpop.permute.xlu0 %739 }
  0x9f   : > { %v753_v27 = vsel %vm749_vm4, %v740_v22, %v3297_v21 }
  0xa0   : > { %v806_v28 = vmul.f32 %v778_v19, %v753_v27  ;;  %v452_v19 = vrot.slane %v3182_v26, %v3346_v6  ;;  %v652_v27 = vrot.slane %v3178_v25, %v3333_v60 }
  0xa1   : > { %v3308_v33 = vpop.permute.xlu1 %937  ;;  %v1158_v35 = vld [vmem:[#allocation2 + $0x58] sm:$0xff] }
  0xa2   : > { %v822_v38 = vrot.slane %v806_v28, 4  ;;  %v936_v39 = vpop.permute.xlu0 %935  ;;  %v2790_v40 = vpack.c.bf16 %v1158_v35, %v1150_v34 }
  0xa3   : > { %v949_v41 = vsel %vm945_vm5, %v936_v39, %v3308_v33 }
  0xa4   : > { %838 = vst [vmem:[#allocation2 + $0x98] sm:$0xf0] %v822_v38  ;;  %v1002_v44 = vmul.f32 %v974_v29, %v949_v41  ;;  %2791 = vmatprep.subr.bf16.mxu1 %v2790_v40  ;;  %v1157_v47 = vld [vmem:[#allocation2 + $0x50] sm:$0xff]  ;;  %v3372_v40 = vsub.s32 7, %v3155_v18 }
  0xa5   : > { %v3322_v50 = vpop.permute.xlu1 %933  ;;  %v1149_v51 = vld [vmem:[#allocation2 + $0x10] sm:$0xff] }
  0xa6   : > { %v1018_v52 = vrot.slane %v1002_v44, 4  ;;  %v950_v53 = vsel %vm945_vm5, %v3322_v50, %v936_v39  ;;  %v3327_v55 = vpop.permute.xlu0 %737  ;;  %v2792_v57 = vpack.c.bf16 %v1157_v47, %v1149_v51  ;;  %v648_v39 = vrot.slane %v3178_v25, %v3346_v6 }
  0xa7   : > { %v1001_v58 = vmul.f32 %v970_v43, %v950_v53  ;;  %v754_v59 = vsel %vm749_vm4, %v3327_v55, %v740_v22 }
  0xa8   : > { %1034 = vst [vmem:[#allocation2 + $0xd8] sm:$0xf0] %v1018_v52  ;;  %v805_v61 = vmul.f32 %v774_v46, %v754_v59  ;;  %2793 = vmatpush1.bf16.msra.mxu1 %v2792_v57 }
  0xa9   : > { %v1017_v0 = vrot.slane %v1001_v58, 4  ;;  %v3338_v1 = vpop.permute.xlu1 %851  ;;  %v566_v58 = vrot.slane %v3246_v54, %v3333_v60 }
  0xaa   : > { %v821_v2 = vrot.slane %v805_v61, 4  ;;  %v850_v3 = vpop.permute.xlu0 %849  ;;  %v480_v61 = vrot.slane %v3182_v26, %v3372_v40 }
  0xab   : > { %1033 = vst [vmem:[#allocation2 + $0xd0] sm:$0xf0] %v1017_v0  ;;  %v863_v4 = vsel %vm859_vm6, %v850_v3, %v3338_v1  ;;  %v1166_v44 = vld [vmem:[#allocation2 + $0x98] sm:$0xff] }
  0xac   : > { %837 = vst [vmem:[#allocation2 + $0x90] sm:$0xf0] %v821_v2  ;;  %v916_v7 = vmul.f32 %v888_v63, %v863_v4 }
  0xad   : > { %v420_v11 = vpop.permute.xlu1 %419 }
  0xae   : > { %924 = vst [vmem:[#allocation2 + $0xd8] sm:$0xf] %v916_v7  ;;  %v442_v12 = vsel %vm435_vm1, %v420_v11, %v3234_v49  ;;  %v3353_v14 = vpop.permute.xlu0 %847 }
  0xaf   : > { %v490_v16 = vmul.f32 %v456_v5, %v442_v12  ;;  %v864_v17 = vsel %vm859_vm6, %v3353_v14, %v850_v3 }
  0xb0   : > { %v915_v22 = vmul.f32 %v884_v10, %v864_v17  ;;  %v3393_v17 = vsub.s32 6, %v3155_v18 }
  0xb1   : > { %v506_v28 = vrot.slane %v490_v16, 4  ;;  %v434_v29 = vpop.permute.xlu1 %433  ;;  %v676_v16 = vrot.slane %v3178_v25, %v3372_v40 }
  0xb2   : > { %923 = vst [vmem:[#allocation2 + $0xd0] sm:$0xf] %v915_v22  ;;  %v443_v49 = vsel %vm435_vm1, %v434_v29, %v420_v11  ;;  %v616_v31 = vpop.permute.xlu0 %615  ;;  %v366_v11 = vrot.slane %v3221_v42, %v3346_v6 }
  0xb3   : > { %522 = vst [vmem:[#allocation2 + $0x8] sm:$0xf0] %v506_v28  ;;  %v489_v34 = vmul.f32 %v452_v19, %v443_v49  ;;  %v638_v35 = vsel %vm631_vm0, %v616_v31, %v3226_v45  ;;  %v1165_v0 = vld [vmem:[#allocation2 + $0x90] sm:$0xff]  ;;  %v562_v49 = vrot.slane %v3246_v54, %v3346_v6 }
  0xb4   : > { %v686_v38 = vmul.f32 %v652_v27, %v638_v35 }
  0xb5   : > { %v505_v41 = vrot.slane %v489_v34, 4  ;;  %v333_v43 = vpop.permute.xlu1 %332  ;;  %v1174_v46 = vld [vmem:[#allocation2 + $0xd8] sm:$0xff]  ;;  %v476_v34 = vrot.slane %v3182_v26, %v3393_v17 }
  0xb6   : > { %v702_v47 = vrot.slane %v686_v38, 4  ;;  %v357_v51 = vsel %vm350_vm2, %v333_v43, %v3287_v13  ;;  %v630_v45 = vpop.permute.xlu0 %629  ;;  %v2794_v52 = vpack.c.bf16 %v1174_v46, %v1166_v44  ;;  %v394_v44 = vrot.slane %v3221_v42, %v3372_v40 }
  0xb7   : > { %521 = vst [vmem:[#allocation2] sm:$0xf0] %v505_v41  ;;  %v404_v53 = vmul.f32 %v370_v37, %v357_v51  ;;  %v639_v57 = vsel %vm631_vm0, %v630_v45, %v616_v31 }
  0xb8   : > { %718 = vst [vmem:[#allocation2 + $0x48] sm:$0xf0] %v702_v47  ;;  %v685_v59 = vmul.f32 %v648_v39, %v639_v57  ;;  %2795 = vmatprep.subr.bf16.mxu1 %v2794_v52  ;;  %v672_v47 = vrot.slane %v3178_v25, %v3393_v17 }
  0xb9   : > { %412 = vst [vmem:[#allocation2 + $0x8] sm:$0xf] %v404_v53  ;;  %v530_v63 = vpop.permute.xlu1 %529  ;;  %v1173_v13 = vld [vmem:[#allocation2 + $0xd0] sm:$0xff] }
  0xba   : > { %v701_v2 = vrot.slane %v685_v59, 4  ;;  %v552_v3 = vsel %vm545_vm3, %v530_v63, %v3276_v9  ;;  %v432_v4 = vpop.permute.xlu0 %431  ;;  %v2796_v5 = vpack.c.bf16 %v1173_v13, %v1165_v0  ;;  %v770_v0 = vrot.slane %v3274_v8, %v3333_v60 }
  0xbb   : > { %v600_v7 = vmul.f32 %v566_v58, %v552_v3  ;;  %v436_v10 = vsel %vm435_vm1, %v432_v4, %v434_v29 }
  0xbc   : > { %717 = vst [vmem:[#allocation2 + $0x40] sm:$0xf0] %v701_v2  ;;  %v496_v12 = vmul.f32 %v480_v61, %v436_v10  ;;  %2797 = vmatpush1.bf16.msra.mxu1 %v2796_v5  ;;  %v590_v2 = vrot.slane %v3246_v54, %v3372_v40  ;;  %v2749_v5 = vld [vmem:[%s4375_s4 + $0x7] ss:$8 sm:$0xf0] }
  0xbd   : > { %608 = vst [vmem:[#allocation2 + $0x48] sm:$0xf] %v600_v7  ;;  %v347_v9 = vpop.permute.xlu1 %346 }
  0xbe   : > { %v512_v19 = vrot.slane %v496_v12, 4  ;;  %v358_v22 = vsel %vm350_vm2, %v347_v9, %v333_v43  ;;  %v628_v27 = vpop.permute.xlu0 %627 }
  0xbf   : > { %v403_v28 = vmul.f32 %v366_v11, %v358_v22  ;;  %v632_v29 = vsel %vm631_vm0, %v628_v27, %v630_v45 }
  0xc0   : > { %528 = vst [vmem:[#allocation2 + $0x38] sm:$0xf0] %v512_v19  ;;  %v692_v31 = vmul.f32 %v676_v16, %v632_v29  ;;  %v1148_v51 = vld [vmem:[#allocation2 + $0x8] sm:$0xff]  ;;  %v966_v19 = vrot.slane %v3295_v20, %v3333_v60 }
  0xc1   : > { %411 = vst [vmem:[#allocation2] sm:$0xf] %v403_v28  ;;  %v544_v35 = vpop.permute.xlu1 %543 }
  0xc2   : > { %v708_v37 = vrot.slane %v692_v31, 4  ;;  %v553_v38 = vsel %vm545_vm3, %v544_v35, %v530_v63  ;;  %v3405_v39 = vpop.permute.xlu0 %429 }
  0xc3   : > { %v599_v41 = vmul.f32 %v562_v49, %v553_v38  ;;  %v437_v43 = vsel %vm435_vm1, %v3405_v39, %v432_v4  ;;  %v2748_v4 = vld [vmem:[%s4375_s4 + $0x7] ss:$8 sm:$0xf] }
  0xc4   : > { %724 = vst [vmem:[#allocation2 + $0x78] sm:$0xf0] %v708_v37  ;;  %v495_v46 = vmul.f32 %v476_v34, %v437_v43  ;;  %v1156_v45 = vld [vmem:[#allocation2 + $0x48] sm:$0xff]  ;;  %v3438_v28 = vor.u32 %v2749_v5, %v2748_v4 }
  0xc5   : > { %607 = vst [vmem:[#allocation2 + $0x40] sm:$0xf] %v599_v41  ;;  %v345_v52 = vpop.permute.xlu1 %344  ;;  %v2782_v53 = vpack.c.bf16 %v1156_v45, %v1148_v51  ;;  %v766_v51 = vrot.slane %v3274_v8, %v3346_v6 }
  0xc6   : > { %v511_v57 = vrot.slane %v495_v46, 4  ;;  %v351_v58 = vsel %vm350_vm2, %v345_v52, %v347_v9  ;;  %v3416_v59 = vpop.permute.xlu0 %625  ;;  %v1084_v38 = vrot.slane %v3438_v28, %v3176_v24 }
  0xc7   : > { %v410_v61 = vmul.f32 %v394_v44, %v351_v58  ;;  %v633_v63 = vsel %vm631_vm0, %v3416_v59, %v628_v27  ;;  %2783 = vmatprep.subr.bf16.mxu0 %v2782_v53  ;;  %v586_v53 = vrot.slane %v3246_v54, %v3393_v17 }
  0xc8   : > { %527 = vst [vmem:[#allocation2 + $0x30] sm:$0xf0] %v511_v57  ;;  %v691_v13 = vmul.f32 %v672_v47, %v633_v63  ;;  %v1147_v22 = vld [vmem:[#allocation2] sm:$0xff] }
  0xc9   : > { %418 = vst [vmem:[#allocation2 + $0x38] sm:$0xf] %v410_v61  ;;  %v736_v3 = vpop.permute.xlu1 %735 }
  0xca   : > { %v707_v7 = vrot.slane %v691_v13, 4  ;;  %v755_v10 = vsel %vm749_vm4, %v736_v3, %v3327_v55  ;;  %v542_v11 = vpop.permute.xlu0 %541 }
  0xcb   : > { %v804_v12 = vmul.f32 %v770_v0, %v755_v10  ;;  %v546_v16 = vsel %vm545_vm3, %v542_v11, %v544_v35  ;;  %v390_v35 = vrot.slane %v3221_v42, %v3393_v17  ;;  %v1080_v0 = vrot.slane %v3438_v28, %v3190_v30 }
  0xcc   : > { %723 = vst [vmem:[#allocation2 + $0x70] sm:$0xf0] %v707_v7  ;;  %v606_v9 = vmul.f32 %v590_v2, %v546_v16  ;;  %v1155_v27 = vld [vmem:[#allocation2 + $0x40] sm:$0xff]  ;;  %v962_v2 = vrot.slane %v3295_v20, %v3346_v6 }
  0xcd   : > { %v820_v29 = vrot.slane %v804_v12, 4  ;;  %v1046_v49 = vpop.permute.xlu1 %1045  ;;  %v2784_v31 = vpack.c.bf16 %v1155_v27, %v1147_v22  ;;  %v880_v12 = vrot.slane %v3320_v48, %v3333_v60 }
  0xce   : > { %614 = vst [vmem:[#allocation2 + $0x78] sm:$0xf] %v606_v9  ;;  %v932_v34 = vpop.permute.xlu0 %931  ;;  %v794_v9 = vrot.slane %v3274_v8, %v3372_v40 }
  0xcf   : > { %836 = vst [vmem:[#allocation2 + $0x88] sm:$0xf0] %v820_v29  ;;  %v951_v55 = vsel %vm945_vm5, %v932_v34, %v3322_v50  ;;  %2785 = vmatpush1.bf16.msra.mxu0 %v2784_v31 }
  0xd0   : > { %v1000_v37 = vmul.f32 %v966_v19, %v951_v55  ;;  %v790_v55 = vrot.slane %v3274_v8, %v3393_v17 }
  0xd1   : > { %v3448_v41 = vpop.permute.xlu1 %342 }
  0xd2   : > { %v1016_v43 = vrot.slane %v1000_v37, 4  ;;  %v352_v44 = vsel %vm350_vm2, %v3448_v41, %v345_v52  ;;  %v3453_v46 = vpop.permute.xlu0 %1047  ;;  %v990_v37 = vrot.slane %v3295_v20, %v3372_v40 }
  0xd3   : > { %v409_v50 = vmul.f32 %v390_v35, %v352_v44  ;;  %v1059_v47 = vsel %vm1055_vm7, %v1046_v49, %v3453_v46 }
  0xd4   : > { %1032 = vst [vmem:[#allocation2 + $0xc8] sm:$0xf0] %v1016_v43  ;;  %v1112_v45 = vmul.f32 %v1084_v38, %v1059_v47 }
  0xd5   : > { %417 = vst [vmem:[#allocation2 + $0x30] sm:$0xf] %v409_v50  ;;  %v734_v57 = vpop.permute.xlu1 %733  ;;  %v1162_v43 = vld [vmem:[#allocation2 + $0x78] sm:$0xff] }
  0xd6   : > { %1120 = vst [vmem:[#allocation2 + $0x118] sm:$0xf] %v1112_v45  ;;  %v756_v52 = vsel %vm749_vm4, %v734_v57, %v736_v3  ;;  %v3464_v58 = vpop.permute.xlu0 %539 }
  0xd7   : > { %v803_v61 = vmul.f32 %v766_v51, %v756_v52  ;;  %v547_v63 = vsel %vm545_vm3, %v3464_v58, %v542_v11  ;;  %v3505_v52 = vld [vmem:[%s4373_s2] sm:$0xff] }
  0xd8   : > { %v605_v13 = vmul.f32 %v586_v53, %v547_v63  ;;  %v986_v53 = vrot.slane %v3295_v20, %v3393_v17 }
  0xd9   : > { %v819_v4 = vrot.slane %v803_v61, 4  ;;  %v3473_v5 = vpop.permute.xlu1 %1043 }
  0xda   : > { %613 = vst [vmem:[#allocation2 + $0x70] sm:$0xf] %v605_v13  ;;  %v1060_v3 = vsel %vm1055_vm7, %v3473_v5, %v1046_v49  ;;  %v930_v7 = vpop.permute.xlu0 %929 }
  0xdb   : > { %835 = vst [vmem:[#allocation2 + $0x80] sm:$0xf0] %v819_v4  ;;  %v1111_v10 = vmul.f32 %v1080_v0, %v1060_v3  ;;  %v952_v11 = vsel %vm945_vm5, %v930_v7, %v932_v34  ;;  %v876_v0 = vrot.slane %v3320_v48, %v3346_v6 }
  0xdc   : > { %v999_v16 = vmul.f32 %v962_v2, %v952_v11  ;;  %v1153_v2 = vld [vmem:[#allocation2 + $0x30] sm:$0xff] }
  0xdd   : > { %1119 = vst [vmem:[#allocation2 + $0x110] sm:$0xf] %v1111_v10  ;;  %v846_v19 = vpop.permute.xlu1 %845  ;;  %v1182_v22 = vld [vmem:[#allocation2 + $0x118] sm:$0xff] }
  0xde   : > { %v1015_v27 = vrot.slane %v999_v16, 4  ;;  %v865_v29 = vsel %vm859_vm6, %v846_v19, %v3353_v14  ;;  %1279 = vmatprep.subr.mxu1 %v1182_v22  ;;  %v748_v49 = vpop.permute.xlu0 %747  ;;  %v3517_v16 = vsub.s32 4, %v3155_v18 }
  0xdf   : > { %v914_v31 = vmul.f32 %v880_v12, %v865_v29  ;;  %v757_v34 = vsel %vm749_vm4, %v748_v49, %v734_v57  ;;  %v1154_v57 = vld [vmem:[#allocation2 + $0x38] sm:$0xff]  ;;  %v3528_v29 = vld [vmem:[%s4373_s2 + $0x8] sm:$0xff] }
  0xe0   : > { %1031 = vst [vmem:[#allocation2 + $0xc0] sm:$0xf0] %v1015_v27  ;;  %v810_v35 = vmul.f32 %v794_v9, %v757_v34  ;;  %v2806_v13 = vpack.c.bf16 %v1162_v43, %v1154_v57  ;;  %v3522_v27 = vsub.s32 5, %v3155_v18  ;;  %v904_v34 = vrot.slane %v3320_v48, %v3372_v40 }
  0xe1   : > { %922 = vst [vmem:[#allocation2 + $0xc8] sm:$0xf] %v914_v31  ;;  %v3493_v38 = vpop.permute.xlu1 %745  ;;  %v1161_v47 = vld [vmem:[#allocation2 + $0x70] sm:$0xff]  ;;  %v900_v31 = vrot.slane %v3320_v48, %v3393_v17 }
  0xe2   : > { %v826_v44 = vrot.slane %v810_v35, 4  ;;  %v750_v14 = vsel %vm749_vm4, %v3493_v38, %v748_v49  ;;  %v944_v50 = vpop.permute.xlu0 %943  ;;  %v472_v57 = vrot.slane %v3182_v26, %v3522_v27 }
  0xe3   : > { %v809_v51 = vmul.f32 %v790_v55, %v750_v14  ;;  %v953_v45 = vsel %vm945_vm5, %v944_v50, %v930_v7  ;;  %v2808_v7 = vpack.c.bf16 %v1161_v47, %v1153_v2  ;;  %v668_v47 = vrot.slane %v3178_v25, %v3522_v27 }
  0xe4   : > { %842 = vst [vmem:[#allocation2 + $0xb8] sm:$0xf0] %v826_v44  ;;  %v1006_v61 = vmul.f32 %v990_v37, %v953_v45  ;;  %v1181_v63 = vld [vmem:[#allocation2 + $0x110] sm:$0xff]  ;;  %v664_v44 = vrot.slane %v3178_v25, %v3517_v16  ;;  %v582_v2 = vrot.slane %v3246_v54, %v3522_v27 }
  0xe5   : > { %v825_v4 = vrot.slane %v809_v51, 4  ;;  %v3509_v3 = vpop.permute.xlu1 %941  ;;  %1280 = vmatpush1.msra.mxu1 %v1181_v63 }
  0xe6   : > { %v1022_v10 = vrot.slane %v1006_v61, 4  ;;  %v946_v11 = vsel %vm945_vm5, %v3509_v3, %v944_v50  ;;  %v844_v12 = vpop.permute.xlu0 %843  ;;  %2807 = vmatprep.subr.bf16.mxu1 %v2806_v13  ;;  %2752 = vmatmul.mubr.msk.f32.vlgmr.msra.gmra.mrb[0].mxu1 %vm1187_vm8, %v3505_v52  ;;  %v578_v13 = vrot.slane %v3246_v54, %v3517_v16 }
  0xe7   : > { %841 = vst [vmem:[#allocation2 + $0xb0] sm:$0xf0] %v825_v4  ;;  %v1005_v9 = vmul.f32 %v986_v53, %v946_v11  ;;  %v866_v22 = vsel %vm859_vm6, %v844_v12, %v846_v19  ;;  %2809 = vmatpush1.bf16.msra.mxu1 %v2808_v7  ;;  %1341 = vmatprep.mubr.f32.mxu1 %v4379_v15  ;;  %v1164_v19 = vld [vmem:[#allocation2 + $0x88] sm:$0xff] }
  0xe8   : > { %1038 = vst [vmem:[#allocation2 + $0xf8] sm:$0xf0] %v1022_v10  ;;  %v913_v49 = vmul.f32 %v876_v0, %v866_v22  ;;  %v1172_v55 = vld [vmem:[#allocation2 + $0xc8] sm:$0xff]  ;;  %v468_v53 = vrot.slane %v3182_v26, %v3517_v16 }
  0xe9   : > { %v1021_v35 = vrot.slane %v1005_v9, 4  ;;  %v3534_v18 = vpop.permute.xlu1 %855  ;;  %v2786_v37 = vpack.c.bf16 %v1172_v55, %v1164_v19 }
  0xea   : > { %921 = vst [vmem:[#allocation2 + $0xc0] sm:$0xf] %v913_v49  ;;  %v858_v43 = vpop.permute.xlu0 %857  ;;  %2753 = vmatmul.mubr.msk.f32.gmra.mrb[2].mxu1 %vm1187_vm8, %v3528_v29 }
  0xeb   : > { %1037 = vst [vmem:[#allocation2 + $0xf0] sm:$0xf0] %v1021_v35  ;;  %v860_v14 = vsel %vm859_vm6, %v3534_v18, %v858_v43  ;;  %v867_v50 = vsel %vm859_vm6, %v858_v43, %v844_v12  ;;  %2787 = vmatprep.subr.bf16.mxu0 %v2786_v37  ;;  %1489 = vmatprep.mubr.f32.mxu1 %v4379_v15 }
  0xec   : > { %v919_v51 = vmul.f32 %v900_v31, %v860_v14  ;;  %v920_v45 = vmul.f32 %v904_v34, %v867_v50  ;;  %v386_v12 = vrot.slane %v3221_v42, %v3522_v27  ;;  %v1072_v31 = vrot.slane %v3438_v28, %v3346_v6 }
  0xed   : > { %v624_v61 = vpop.permute.xlu1 %623 }
  0xee   : > { %927 = vst [vmem:[#allocation2 + $0xf0] sm:$0xf] %v919_v51  ;;  %928 = vst [vmem:[#allocation2 + $0xf8] sm:$0xf] %v920_v45  ;;  %v634_v63 = vsel %vm631_vm0, %v624_v61, %v3416_v59  ;;  %v635_v25 = vsel %vm631_vm0, %v3197_v32, %v624_v61  ;;  %v428_v0 = vpop.permute.xlu0 %427  ;;  %v382_v32 = vrot.slane %v3221_v42, %v3517_v16 }
  0xef   : > { %v689_v4 = vmul.f32 %v664_v44, %v635_v25  ;;  %v690_v26 = vmul.f32 %v668_v47, %v634_v63  ;;  %v438_v7 = vsel %vm435_vm1, %v428_v0, %v3405_v39  ;;  %v439_v59 = vsel %vm435_vm1, %v3208_v36, %v428_v0  ;;  %v1163_v44 = vld [vmem:[#allocation2 + $0x80] sm:$0xff]  ;;  %v1170_v47 = vld [vmem:[#allocation2 + $0xb8] sm:$0xff] }
  0xf0   : > { %v493_v10 = vmul.f32 %v468_v53, %v439_v59  ;;  %v494_v11 = vmul.f32 %v472_v57, %v438_v7  ;;  %v1169_v53 = vld [vmem:[#allocation2 + $0xb0] sm:$0xff]  ;;  %v978_v0 = vrot.slane %v3295_v20, %v3517_v16  ;;  %v786_v7 = vrot.slane %v3274_v8, %v3522_v27 }
  0xf1   : > { %v705_v9 = vrot.slane %v689_v4, 4  ;;  %v706_v54 = vrot.slane %v690_v26, 4  ;;  %v538_v22 = vpop.permute.xlu1 %537  ;;  %v1171_v49 = vld [vmem:[#allocation2 + $0xc0] sm:$0xff]  ;;  %v782_v26 = vrot.slane %v3274_v8, %v3517_v16 }
  0xf2   : > { %v509_v39 = vrot.slane %v493_v10, 4  ;;  %v510_v34 = vrot.slane %v494_v11, 4  ;;  %v548_v36 = vsel %vm545_vm3, %v538_v22, %v3464_v58  ;;  %v549_v19 = vsel %vm545_vm3, %v3256_v62, %v538_v22  ;;  %v341_v55 = vpop.permute.xlu0 %340 }
  0xf3   : > { %721 = vst [vmem:[#allocation2 + $0x60] sm:$0xf0] %v705_v9  ;;  %722 = vst [vmem:[#allocation2 + $0x68] sm:$0xf0] %v706_v54  ;;  %v603_v42 = vmul.f32 %v578_v13, %v549_v19  ;;  %v604_v35 = vmul.f32 %v582_v2, %v548_v36  ;;  %v353_v37 = vsel %vm350_vm2, %v341_v55, %v3448_v41 }
  0xf4   : > { %v354_v43 = vsel %vm350_vm2, %v3248_v56, %v341_v55  ;;  %525 = vst [vmem:[#allocation2 + $0x20] sm:$0xf0] %v509_v39  ;;  %526 = vst [vmem:[#allocation2 + $0x28] sm:$0xf0] %v510_v34  ;;  %v408_v14 = vmul.f32 %v386_v12, %v353_v37  ;;  %v2788_v50 = vpack.c.bf16 %v1171_v49, %v1163_v44 }
  0xf5   : > { %v407_v58 = vmul.f32 %v382_v32, %v354_v43  ;;  %v1076_v62 = vrot.slane %v3438_v28, %v3333_v60  ;;  %611 = vst [vmem:[#allocation2 + $0x60] sm:$0xf] %v603_v42  ;;  %612 = vst [vmem:[#allocation2 + $0x68] sm:$0xf] %v604_v35  ;;  %v1040_v51 = vpop.permute.xlu1 %1039  ;;  %v1178_v45 = vld [vmem:[#allocation2 + $0xf8] sm:$0xff]  ;;  %v1177_v41 = vld [vmem:[#allocation2 + $0xf0] sm:$0xff]  ;;  %v982_v13 = vrot.slane %v3295_v20, %v3522_v27 }
  0xf6   : > { %416 = vst [vmem:[#allocation2 + $0x28] sm:$0xf] %v408_v14  ;;  %2789 = vmatpush1.bf16.msra.mxu0 %v2788_v50  ;;  %v1042_v56 = vpop.permute.xlu0 %1041  ;;  %v2810_v57 = vpack.c.bf16 %v1178_v45, %v1170_v47  ;;  %v2812_v61 = vpack.c.bf16 %v1177_v41, %v1169_v53  ;;  %v1100_v22 = vrot.slane %v3438_v28, %v3372_v40 }
  0xf7   : > { %415 = vst [vmem:[#allocation2 + $0x20] sm:$0xf] %v407_v58  ;;  %v1061_v63 = vsel %vm1055_vm7, %v1042_v56, %v3473_v5  ;;  %v1062_v25 = vsel %vm1055_vm7, %v1040_v51, %v1042_v56  ;;  %v1088_v55 = vrot.slane %v3438_v28, %v3517_v16  ;;  %v1092_v42 = vrot.slane %v3438_v28, %v3522_v27 }
  0xf8   : > { %v1109_v2 = vmul.f32 %v1072_v31, %v1062_v25  ;;  %v1110_v4 = vmul.f32 %v1076_v62, %v1061_v63  ;;  %2811 = vmatprep.subr.bf16.mxu1 %v2810_v57  ;;  %v892_v14 = vrot.slane %v3320_v48, %v3517_v16  ;;  %v896_v50 = vrot.slane %v3320_v48, %v3522_v27 }
  0xf9   : > { %2813 = vmatpush1.bf16.msra.mxu1 %v2812_v61  ;;  %v940_v5 = vpop.permute.xlu1 %939 }
  0xfa   : > { %1117 = vst [vmem:[#allocation2 + $0x100] sm:$0xf] %v1109_v2  ;;  %1118 = vst [vmem:[#allocation2 + $0x108] sm:$0xf] %v1110_v4  ;;  %v947_v59 = vsel %vm945_vm5, %v940_v5, %v3509_v3  ;;  %v948_v20 = vsel %vm945_vm5, %v3308_v33, %v940_v5  ;;  %v744_v10 = vpop.permute.xlu0 %743  ;;  %v1096_v3 = vrot.slane %v3438_v28, %v3393_v17 }
  0xfb   : > { %v1003_v11 = vmul.f32 %v978_v0, %v948_v20  ;;  %v1004_v32 = vmul.f32 %v982_v13, %v947_v59  ;;  %v751_v12 = vsel %vm749_vm4, %v744_v10, %v3493_v38  ;;  %v752_v8 = vsel %vm749_vm4, %v3297_v21, %v744_v10 }
  0xfc   : > { %v807_v9 = vmul.f32 %v782_v26, %v752_v8  ;;  %v808_v54 = vmul.f32 %v786_v7, %v751_v12  ;;  %v1160_v19 = vld [vmem:[#allocation2 + $0x68] sm:$0xff]  ;;  %v1159_v43 = vld [vmem:[#allocation2 + $0x60] sm:$0xff] }
  0xfd   : > { %v1019_v33 = vrot.slane %v1003_v11, 4  ;;  %v1020_v49 = vrot.slane %v1004_v32, 4  ;;  %v1052_v31 = vpop.permute.xlu1 %1051  ;;  %v1152_v35 = vld [vmem:[#allocation2 + $0x28] sm:$0xff] }
  0xfe   : > { %v823_v39 = vrot.slane %v807_v9, 4  ;;  %v824_v34 = vrot.slane %v808_v54, 4  ;;  %v1054_v36 = vpop.permute.xlu0 %1053  ;;  %v1151_v37 = vld [vmem:[#allocation2 + $0x20] sm:$0xff]  ;;  %v2798_v41 = vpack.c.bf16 %v1160_v19, %v1152_v35 }
  0xff   : > { %1035 = vst [vmem:[#allocation2 + $0xe0] sm:$0xf0] %v1019_v33  ;;  %1036 = vst [vmem:[#allocation2 + $0xe8] sm:$0xf0] %v1020_v49  ;;  %v1056_v21 = vsel %vm1055_vm7, %v1052_v31, %v1054_v36  ;;  %v1063_v38 = vsel %vm1055_vm7, %v1054_v36, %v1040_v51  ;;  %v2800_v56 = vpack.c.bf16 %v1159_v43, %v1151_v37 }
 0x100   : > { %839 = vst [vmem:[#allocation2 + $0xa0] sm:$0xf0] %v823_v39  ;;  %840 = vst [vmem:[#allocation2 + $0xa8] sm:$0xf0] %v824_v34  ;;  %v1115_v44 = vmul.f32 %v1096_v3, %v1056_v21  ;;  %v1116_v58 = vmul.f32 %v1100_v22, %v1063_v38 }
 0x101   : > { %v1050_v62 = vpop.permute.xlu1 %1049  ;;  %v1180_v47 = vld [vmem:[#allocation2 + $0x108] sm:$0xff]  ;;  %v1179_v51 = vld [vmem:[#allocation2 + $0x100] sm:$0xff] }
 0x102   : > { %1123 = vst [vmem:[#allocation2 + $0x130] sm:$0xf] %v1115_v44  ;;  %1124 = vst [vmem:[#allocation2 + $0x138] sm:$0xf] %v1116_v58  ;;  %v1057_v28 = vsel %vm1055_vm7, %v1050_v62, %v1052_v31  ;;  %v1058_v45 = vsel %vm1055_vm7, %v3453_v46, %v1050_v62  ;;  %v854_v53 = vpop.permute.xlu0 %853  ;;  %1202 = vmatprep.subr.mxu0 %v1180_v47 }
 0x103   : > { %v1113_v57 = vmul.f32 %v1088_v55, %v1058_v45  ;;  %v1114_v61 = vmul.f32 %v1092_v42, %v1057_v28  ;;  %v861_v48 = vsel %vm859_vm6, %v854_v53, %v3534_v18  ;;  %v862_v63 = vsel %vm859_vm6, %v3338_v1, %v854_v53  ;;  %1203 = vmatpush1.msra.mxu0 %v1179_v51 }
 0x104   : > { %v917_v25 = vmul.f32 %v892_v14, %v862_v63  ;;  %v918_v0 = vmul.f32 %v896_v50, %v861_v48  ;;  %2750 = vmatmul.mubr.msk.f32.vlgmr.msra.gmra.mrb[0].mxu0 %vm1187_vm8, %v3505_v52  ;;  %2799 = vmatprep.subr.bf16.mxu0 %v2798_v41 }
 0x105   : > { %1121 = vst [vmem:[#allocation2 + $0x120] sm:$0xf] %v1113_v57  ;;  %1122 = vst [vmem:[#allocation2 + $0x128] sm:$0xf] %v1114_v61  ;;  %2801 = vmatpush1.bf16.msra.mxu0 %v2800_v56  ;;  %1264 = vmatprep.mubr.f32.mxu0 %v4379_v15  ;;  %v2953_v57 = vmov 2   ;;  %v2954_v61 = vmov 1  }
 0x106   : > { %925 = vst [vmem:[#allocation2 + $0xe0] sm:$0xf] %v917_v25  ;;  %926 = vst [vmem:[#allocation2 + $0xe8] sm:$0xf] %v918_v0  ;;  %2924 = vset.pattern.permute.xlu1 %v2953_v57  ;;  %2923 = vset.pattern.permute.xlu0 %v2954_v61  ;;  %v2934_v25 = vld [vmem:[%s4376_s5] sm:$0xff] }
 0x107   : > { %v1168_v1 = vld [vmem:[#allocation2 + $0xa8] sm:$0xff]  ;;  %v1167_v2 = vld [vmem:[#allocation2 + $0xa0] sm:$0xff] }
 0x108   : > { %2751 = vmatmul.mubr.msk.f32.gmra.mrb[2].mxu0 %vm1187_vm8, %v3528_v29 }
 0x109   : > { %v1186_v46 = vld [vmem:[#allocation2 + $0x138] sm:$0xff]  ;;  %v1185_v18 = vld [vmem:[#allocation2 + $0x130] sm:$0xff]  ;;  %1412 = vmatprep.mubr.f32.mxu0 %v4379_v15 }
 0x10a   : > { %1433 = vmatprep.subr.mxu1 %v1186_v46 }
 0x10b   : > { %1434 = vmatpush1.msra.mxu1 %v1185_v18  ;;  %v1584_v18 = vld [vmem:[%s4375_s4] ss:$8 sm:$0xf] }
 0x10c   : > { %2756 = vmatmul.mubr.msk.f32.vlgmr.msra.gmra.mrb[4].mxu1 %vm1187_vm8, %v3505_v52  ;;  %v1184_v5 = vld [vmem:[#allocation2 + $0x128] sm:$0xff]  ;;  %v1183_v59 = vld [vmem:[#allocation2 + $0x120] sm:$0xff] }
 0x10d   : > { %v1176_v13 = vld [vmem:[#allocation2 + $0xe8] sm:$0xff]  ;;  %v1175_v4 = vld [vmem:[#allocation2 + $0xe0] sm:$0xff]  ;;  %1495 = vmatprep.mubr.f32.mxu1 %v4379_v15 }
 0x10e   : > { %v2802_v26 = vpack.c.bf16 %v1176_v13, %v1168_v1  ;;  %v2804_v7 = vpack.c.bf16 %v1175_v4, %v1167_v2  ;;  %v1585_v1 = vld [vmem:[%s4375_s4] ss:$8 sm:$0xf0]  ;;  %v2758_v13 = vld [vmem:[%s4375_s4 + $0x1] ss:$8 sm:$0xf] }
 0x10f   : > { %v2759_v2 = vld [vmem:[%s4375_s4 + $0x1] ss:$8 sm:$0xf0] }
 0x110   : > { %2803 = vmatprep.subr.bf16.mxu0 %v2802_v26  ;;  %2757 = vmatmul.mubr.msk.f32.gmra.mrb[6].mxu1 %vm1187_vm8, %v3528_v29 }
 0x111   : > { %2805 = vmatpush1.bf16.msra.mxu0 %v2804_v7  ;;  %2458 = vmatprep.mubr.f32.mxu1 %v4379_v15  ;;  %v3855_v7 = vor.u32 %v1585_v1, %v1584_v18  ;;  %v2763_v18 = vld [vmem:[%s4375_s4 + $0x3] ss:$8 sm:$0xf0]  ;;  %v2761_v1 = vld [vmem:[%s4375_s4 + $0x2] ss:$8 sm:$0xf0] }
 0x112   : > { %1356 = vmatprep.subr.mxu0 %v1184_v5  ;;  %v3857_v5 = vor.u32 %v2759_v2, %v2758_v13 }
 0x113   : > { %v1506_v20 = vpop.permute.xlu0 %1505 }
 0x115   : > { %1357 = vmatpush1.msra.mxu0 %v1183_v59 }
 0x116   : > { %2754 = vmatmul.mubr.msk.f32.vlgmr.msra.gmra.mrb[4].mxu0 %vm1187_vm8, %v3505_v52 }
 0x117   : > { %1418 = vmatprep.mubr.f32.mxu0 %v4379_v15 }
 0x11a   : > { %2755 = vmatmul.mubr.msk.f32.gmra.mrb[6].mxu0 %vm1187_vm8, %v3528_v29 }
 0x11b   : > { %2387 = vmatprep.mubr.f32.mxu0 %v4379_v15 }
 0x1b9   : > { %v1337_v10 = vpop.f32.mrb[0].mxu1 }
 0x1ba   : > { %v1510_v11 = vadd.f32 %v1506_v20, %v1337_v10  ;;  %v1339_v32 = vpop.f32.mrb[1].mxu1  ;;  %v1595_v10 = vrot.slane %v3855_v7, %v3333_v60 }
 0x1bb   : > { %v1511_v12 = vadd.f32 %v1506_v20, %v1339_v32 }
 0x1bc   : > { %vm1530_vm9 = vcmp.ge.f32.partialorder %v1510_v11, 0.0  ;;  %v1538_v8 = vmul.f32 0.2, %v1510_v11 }
 0x1bd   : > { %vm1531_vm10 = vcmp.ge.f32.partialorder %v1511_v12, 0.0  ;;  %v1539_v52 = vmul.f32 0.2, %v1511_v12 }
 0x1be   : > { %v3666_v29 = vsel %vm1530_vm9, %v1510_v11, %v1538_v8  ;;  %v1679_v11 = vrot.slane %v3857_v5, %v3333_v60  ;;  %vm2319_vm9 = vcmask 588800  }
 0x1bf   : > { %v3668_v9 = vsel %vm1531_vm10, %v1511_v12, %v1539_v52  ;;  %1564 = vrot.lane.b32.xlu0 %v3666_v29, %s2945_s12  ;;  %1554 = vst [vmem:[%s3664_s20 + $0x10] sm:$0xff] %v3666_v29  ;;  %v1603_v52 = vrot.slane %v3855_v7, %v3176_v24 }
 0x1c0   : > { %1555 = vst [vmem:[%s3664_s20 + $0x18] sm:$0xff] %v3668_v9 }
 0x1d7   : > { %v1260_v54 = vpop.f32.mrb[0].mxu0 }
 0x1d8   : > { %v1508_v3 = vadd.f32 %v1506_v20, %v1260_v54  ;;  %v1262_v22 = vpop.f32.mrb[1].mxu0  ;;  %v1683_v54 = vrot.slane %v3857_v5, %v3190_v30 }
 0x1d9   : > { %v1509_v33 = vadd.f32 %v1506_v20, %v1262_v22 }
 0x1da   : > { %vm1528_vm11 = vcmp.ge.f32.partialorder %v1508_v3, 0.0  ;;  %v1536_v49 = vmul.f32 0.2, %v1508_v3 }
 0x1db   : > { %vm1529_vm12 = vcmp.ge.f32.partialorder %v1509_v33, 0.0  ;;  %v1537_v31 = vmul.f32 0.2, %v1509_v33 }
 0x1dc   : > { %v3676_v39 = vsel %vm1528_vm11, %v1508_v3, %v1536_v49 }
 0x1dd   : > { %4397 = vst [vmem:[#allocation4_spill] sm:$0xff] %v3676_v39  ;;  %v3678_v34 = vsel %vm1529_vm12, %v1509_v33, %v1537_v31  ;;  %1644 = vrot.lane.b32.xlu0 %v3676_v39, %s2944_s11  ;;  %1560 = vrot.lane.b32.xlu1 %v3676_v39, %s2945_s12  ;;  %1552 = vst [vmem:[%s3664_s20] sm:$0xff] %v3676_v39  ;;  %v1687_v31 = vrot.slane %v3857_v5, %v3176_v24 }
 0x1de   : > { %4398 = vst [vmem:[#allocation5_spill] sm:$0xff] %v3678_v34  ;;  %1553 = vst [vmem:[%s3664_s20 + $0x8] sm:$0xff] %v3678_v34 }
 0x1df   : > { %v1491_v36 = vpop.f32.mrb[4].mxu1 }
 0x1e0   : > { %v1514_v19 = vadd.f32 %v1506_v20, %v1491_v36  ;;  %v1493_v21 = vpop.f32.mrb[5].mxu1  ;;  %v1599_v36 = vrot.slane %v3855_v7, %v3190_v30 }
 0x1e1   : > { %v1515_v38 = vadd.f32 %v1506_v20, %v1493_v21  ;;  %1648 = vrot.lane.b32.xlu0 %v3666_v29, %s2944_s11  ;;  %1908 = vrot.lane.b32.xlu1 %v3666_v29, %s2947_s14 }
 0x1e2   : > { %vm1534_vm13 = vcmp.ge.f32.partialorder %v1514_v19, 0.0  ;;  %v1542_v55 = vmul.f32 0.2, %v1514_v19 }
 0x1e3   : > { %vm1535_vm14 = vcmp.ge.f32.partialorder %v1515_v38, 0.0  ;;  %v1543_v42 = vmul.f32 0.2, %v1515_v38 }
 0x1e4   : > { %v3692_v35 = vsel %vm1534_vm13, %v1514_v19, %v1542_v55 }
 0x1e5   : > { %4399 = vst [vmem:[#allocation6_spill] sm:$0xff] %v3692_v35  ;;  %v3694_v37 = vsel %vm1535_vm14, %v1515_v38, %v1543_v42  ;;  %1728 = vrot.lane.b32.xlu0 %v3676_v39, %s2946_s13  ;;  %1988 = vrot.lane.b32.xlu1 %v3676_v39, %s2949_s16  ;;  %1558 = vst [vmem:[%s3664_s20 + $0x30] sm:$0xff] %v3692_v35 }
 0x1e6   : > { %4400 = vst [vmem:[#allocation7_spill] sm:$0xff] %v3694_v37  ;;  %1559 = vst [vmem:[%s3664_s20 + $0x38] sm:$0xff] %v3694_v37 }
 0x1e9   : > { %1732 = vrot.lane.b32.xlu0 %v3666_v29, %s2946_s13  ;;  %2156 = vrot.lane.b32.xlu1 %v3676_v39, %s2950_s17  ;;  %v1414_v43 = vpop.f32.mrb[4].mxu0 }
 0x1ea   : > { %v1512_v44 = vadd.f32 %v1506_v20, %v1414_v43  ;;  %v1416_v58 = vpop.f32.mrb[5].mxu0 }
 0x1eb   : > { %v1513_v14 = vadd.f32 %v1506_v20, %v1416_v58 }
 0x1ec   : > { %vm1532_vm15 = vcmp.ge.f32.partialorder %v1512_v44, 0.0  ;;  %v1540_v50 = vmul.f32 0.2, %v1512_v44 }
 0x1ed   : > { %vm1533_vm8 = vcmp.ge.f32.partialorder %v1513_v14, 0.0  ;;  %v1541_v62 = vmul.f32 0.2, %v1513_v14  ;;  %1812 = vrot.lane.b32.xlu0 %v3676_v39, %s2943_s10  ;;  %1562 = vrot.lane.b32.xlu1 %v3678_v34, %s2945_s12 }
 0x1ee   : > { %v3712_v47 = vsel %vm1532_vm15, %v1512_v44, %v1540_v50 }
 0x1ef   : > { %4401 = vst [vmem:[#allocation8_spill] sm:$0xff] %v3712_v47  ;;  %v3714_v51 = vsel %vm1533_vm8, %v1513_v14, %v1541_v62  ;;  %1556 = vst [vmem:[%s3664_s20 + $0x20] sm:$0xff] %v3712_v47 }
 0x1f0   : > { %4402 = vst [vmem:[#allocation9_spill] sm:$0xff] %v3714_v51  ;;  %1557 = vst [vmem:[%s3664_s20 + $0x28] sm:$0xff] %v3714_v51 }
 0x1f1   : > { %1816 = vrot.lane.b32.xlu0 %v3666_v29, %s2943_s10  ;;  %1566 = vrot.lane.b32.xlu1 %v3668_v9, %s2945_s12 }
 0x1f5   : > { %1904 = vrot.lane.b32.xlu0 %v3676_v39, %s2947_s14  ;;  %1646 = vrot.lane.b32.xlu1 %v3678_v34, %s2944_s11 }
 0x1f9   : > { %1992 = vrot.lane.b32.xlu0 %v3666_v29, %s2949_s16  ;;  %1650 = vrot.lane.b32.xlu1 %v3668_v9, %s2944_s11 }
 0x1fd   : > { %2076 = vrot.lane.b32.xlu0 %v3666_v29, %s2948_s15  ;;  %1730 = vrot.lane.b32.xlu1 %v3678_v34, %s2946_s13 }
 0x201   : > { %2072 = vrot.lane.b32.xlu0 %v3676_v39, %s2948_s15  ;;  %1734 = vrot.lane.b32.xlu1 %v3668_v9, %s2946_s13 }
 0x205   : > { %2160 = vrot.lane.b32.xlu0 %v3666_v29, %s2950_s17  ;;  %1814 = vrot.lane.b32.xlu1 %v3678_v34, %s2943_s10 }
 0x209   : > { %1906 = vrot.lane.b32.xlu0 %v3678_v34, %s2947_s14  ;;  %1818 = vrot.lane.b32.xlu1 %v3668_v9, %s2943_s10 }
 0x20d   : > { %1910 = vrot.lane.b32.xlu0 %v3668_v9, %s2947_s14  ;;  %1990 = vrot.lane.b32.xlu1 %v3678_v34, %s2949_s16 }
 0x211   : > { %1994 = vrot.lane.b32.xlu1 %v3668_v9, %s2949_s16  ;;  %1996 = vrot.lane.b32.xlu0 %v3712_v47, %s2949_s16 }
 0x215   : > { %2074 = vrot.lane.b32.xlu1 %v3678_v34, %s2948_s15  ;;  %2080 = vrot.lane.b32.xlu0 %v3712_v47, %s2948_s15 }
 0x219   : > { %2078 = vrot.lane.b32.xlu1 %v3668_v9, %s2948_s15  ;;  %1652 = vrot.lane.b32.xlu0 %v3712_v47, %s2944_s11 }
 0x21d   : > { %2158 = vrot.lane.b32.xlu1 %v3678_v34, %s2950_s17  ;;  %1656 = vrot.lane.b32.xlu0 %v3692_v35, %s2944_s11 }
 0x221   : > { %2162 = vrot.lane.b32.xlu1 %v3668_v9, %s2950_s17  ;;  %2164 = vrot.lane.b32.xlu0 %v3712_v47, %s2950_s17 }
 0x225   : > { %1736 = vrot.lane.b32.xlu0 %v3712_v47, %s2946_s13  ;;  %1912 = vrot.lane.b32.xlu1 %v3712_v47, %s2947_s14 }
 0x229   : > { %1740 = vrot.lane.b32.xlu0 %v3692_v35, %s2946_s13  ;;  %1568 = vrot.lane.b32.xlu1 %v3712_v47, %s2945_s12 }
 0x22d   : > { %1574 = vrot.lane.b32.xlu0 %v3694_v37, %s2945_s12  ;;  %1572 = vrot.lane.b32.xlu1 %v3692_v35, %s2945_s12 }
 0x231   : > { %1742 = vrot.lane.b32.xlu0 %v3694_v37, %s2946_s13  ;;  %1820 = vrot.lane.b32.xlu1 %v3712_v47, %s2943_s10  ;;  %v1565_v28 = vpop.permute.xlu0 %1564 }
 0x235   : > { %2000 = vrot.lane.b32.xlu0 %v3692_v35, %s2949_s16  ;;  %1824 = vrot.lane.b32.xlu1 %v3692_v35, %s2943_s10 }
 0x239   : > { %1658 = vrot.lane.b32.xlu1 %v3694_v37, %s2944_s11  ;;  %1570 = vrot.lane.b32.xlu0 %v3714_v51, %s2945_s12 }
 0x23d   : > { %1826 = vrot.lane.b32.xlu1 %v3694_v37, %s2943_s10  ;;  %1822 = vrot.lane.b32.xlu0 %v3714_v51, %s2943_s10 }
 0x241   : > { %1916 = vrot.lane.b32.xlu1 %v3692_v35, %s2947_s14  ;;  %1914 = vrot.lane.b32.xlu0 %v3714_v51, %s2947_s14 }
 0x245   : > { %2084 = vrot.lane.b32.xlu1 %v3692_v35, %s2948_s15  ;;  %1918 = vrot.lane.b32.xlu0 %v3694_v37, %s2947_s14 }
 0x249   : > { %1654 = vrot.lane.b32.xlu1 %v3714_v51, %s2944_s11  ;;  %2082 = vrot.lane.b32.xlu0 %v3714_v51, %s2948_s15 }
 0x24d   : > { %1738 = vrot.lane.b32.xlu1 %v3714_v51, %s2946_s13  ;;  %2086 = vrot.lane.b32.xlu0 %v3694_v37, %s2948_s15 }
 0x24f   : > { %v3816_v45 = vpop.permute.xlu0 %1644  ;;  %v3818_v53 = vpop.permute.xlu1 %1560 }
 0x251   : > { %1998 = vrot.lane.b32.xlu1 %v3714_v51, %s2949_s16  ;;  %2168 = vrot.lane.b32.xlu0 %v3692_v35, %s2950_s17  ;;  %v1691_v35 = vrot.slane %v3857_v5, %v3517_v16 }
 0x253   : > { %v1649_v41 = vpop.permute.xlu0 %1648  ;;  %v3824_v56 = vpop.permute.xlu1 %1908 }
 0x255   : > { %2002 = vrot.lane.b32.xlu1 %v3694_v37, %s2949_s16  ;;  %1517 = vperm.xlu0 %2923, %v2934_v25  }
 0x257   : > { %v3828_v48 = vpop.permute.xlu0 %1728  ;;  %v3830_v63 = vpop.permute.xlu1 %1988 }
 0x258   : > { %4403 = vst [vmem:[#allocation10_spill] sm:$0xff] %v3830_v63 }
 0x259   : > { %2166 = vrot.lane.b32.xlu1 %v3714_v51, %s2950_s17  ;;  %2925 = vset.pattern.permute.xlu0 %v2953_v57 }
 0x25b   : > { %v1733_v0 = vpop.permute.xlu0 %1732  ;;  %v3837_v46 = vpop.permute.xlu1 %2156 }
 0x25c   : > { %4404 = vst [vmem:[#allocation11_spill] sm:$0xff] %v3837_v46 }
 0x25d   : > { %2170 = vrot.lane.b32.xlu1 %v3694_v37, %s2950_s17  ;;  %v2771_v37 = vld [vmem:[%s4375_s4 + $0x7] ss:$8 sm:$0xf0] }
 0x25f   : > { %v3853_v4 = vpop.permute.xlu0 %1812  ;;  %v1563_v26 = vpop.permute.xlu1 %1562 }
 0x260   : > { %v1582_v32 = vsel %vm350_vm2, %v3818_v53, %v1563_v26  ;;  %v1581_v21 = vsel %vm350_vm2, %v1563_v26, %v1565_v28 }
 0x261   : > { %2316 = vperm.xlu1 %2924, %v2934_v25   ;;  %v1629_v22 = vmul.f32 %v1595_v10, %v1582_v32  ;;  %v1630_v50 = vmul.f32 %v1599_v36, %v1581_v21  ;;  %v2762_v25 = vld [vmem:[%s4375_s4 + $0x3] ss:$8 sm:$0xf] }
 0x262   : > { %v3915_v26 = vor.u32 %v2763_v18, %v2762_v25 }
 0x263   : > { %v1817_v59 = vpop.permute.xlu0 %1816  ;;  %v3859_v20 = vpop.permute.xlu1 %1566 }
 0x264   : > { %v1580_v19 = vsel %vm350_vm2, %v1565_v28, %v3859_v20 }
 0x265   : > { %v1631_v58 = vmul.f32 %v1603_v52, %v1580_v19 }
 0x267   : > { %v3868_v12 = vpop.permute.xlu0 %1904  ;;  %v1647_v8 = vpop.permute.xlu1 %1646 }
 0x268   : > { %v1666_v3 = vsel %vm435_vm1, %v3816_v45, %v1647_v8  ;;  %v1665_v33 = vsel %vm435_vm1, %v1647_v8, %v1649_v41  ;;  %v1851_v8 = vrot.slane %v3915_v26, %v3190_v30 }
 0x269   : > { %v1713_v49 = vmul.f32 %v1679_v11, %v1666_v3  ;;  %v1714_v43 = vmul.f32 %v1683_v54, %v1665_v33  ;;  %v1855_v3 = vrot.slane %v3915_v26, %v3176_v24 }
 0x26b   : > { %v3888_v38 = vpop.permute.xlu0 %1992  ;;  %v3890_v55 = vpop.permute.xlu1 %1650  ;;  %v2814_v42 = vpack.c.bf16 %v1713_v49, %v1629_v22  ;;  %v2832_v28 = vpack.c.bf16 %v1714_v43, %v1630_v50 }
 0x26c   : > { %v1664_v44 = vsel %vm435_vm1, %v1649_v41, %v3890_v55  ;;  %v2760_v41 = vld [vmem:[%s4375_s4 + $0x2] ss:$8 sm:$0xf] }
 0x26d   : > { %v1715_v14 = vmul.f32 %v1687_v31, %v1664_v44  ;;  %2815 = vmatprep.subr.bf16.mxu0 %v2814_v42  ;;  %v3917_v10 = vor.u32 %v2761_v1, %v2760_v41 }
 0x26f   : > { %v3895_v62 = vpop.permute.xlu0 %2076  ;;  %v3897_v57 = vpop.permute.xlu1 %1730  ;;  %v2830_v61 = vpack.c.bf16 %v1715_v14, %v1631_v58  ;;  %v1771_v52 = vrot.slane %v3917_v10, %v3176_v24  ;;  %v1767_v22 = vrot.slane %v3917_v10, %v3190_v30 }
 0x270   : > { %v1749_v49 = vsel %vm545_vm3, %v3897_v57, %v1733_v0 }
 0x271   : > { %2831 = vmatprep.subr.bf16.mxu1 %v2830_v61  ;;  %v1798_v44 = vmul.f32 %v1767_v22, %v1749_v49  ;;  %v2769_v22 = vld [vmem:[%s4375_s4 + $0x6] ss:$8 sm:$0xf0]  ;;  %v2766_v49 = vld [vmem:[%s4375_s4 + $0x5] ss:$8 sm:$0xf] }
 0x272   : > { %2833 = vmatpush1.bf16.msra.mxu1 %v2832_v28 }
 0x273   : > { %v3911_v13 = vpop.permute.xlu0 %2072  ;;  %v3913_v2 = vpop.permute.xlu1 %1734 }
 0x274   : > { %v1748_v33 = vsel %vm545_vm3, %v1733_v0, %v3913_v2 }
 0x275   : > { %v1799_v42 = vmul.f32 %v1771_v52, %v1748_v33 }
 0x277   : > { %v3919_v11 = vpop.permute.xlu0 %2160  ;;  %v3921_v32 = vpop.permute.xlu1 %1814 }
 0x278   : > { %v1833_v54 = vsel %vm631_vm0, %v3921_v32, %v1817_v59 }
 0x279   : > { %v1882_v19 = vmul.f32 %v1851_v8, %v1833_v54  ;;  %v2765_v8 = vld [vmem:[%s4375_s4 + $0x4] ss:$8 sm:$0xf0] }
 0x27b   : > { %v3940_v31 = vpop.permute.xlu0 %1906  ;;  %v3942_v36 = vpop.permute.xlu1 %1818  ;;  %v2836_v61 = vpack.c.bf16 %v1882_v19, %v1798_v44  ;;  %v2767_v19 = vld [vmem:[%s4375_s4 + $0x5] ss:$8 sm:$0xf0] }
 0x27c   : > { %v1832_v21 = vsel %vm631_vm0, %v1817_v59, %v3942_v36  ;;  %v2764_v59 = vld [vmem:[%s4375_s4 + $0x4] ss:$8 sm:$0xf] }
 0x27d   : > { %v1883_v43 = vmul.f32 %v1855_v3, %v1832_v21  ;;  %v2768_v3 = vld [vmem:[%s4375_s4 + $0x6] ss:$8 sm:$0xf]  ;;  %v3973_v33 = vor.u32 %v2765_v8, %v2764_v59 }
 0x27e   : > { %v3981_v21 = vor.u32 %v2769_v22, %v2768_v3 }
 0x27f   : > { %v1911_v58 = vpop.permute.xlu0 %1910  ;;  %v3947_v14 = vpop.permute.xlu1 %1990  ;;  %v2834_v50 = vpack.c.bf16 %v1883_v43, %v1799_v42  ;;  %v1943_v44 = vrot.slane %v3973_v33, %v3190_v30  ;;  %v1947_v8 = vrot.slane %v3973_v33, %v3176_v24 }
 0x280   : > { %v2115_v59 = vrot.slane %v3981_v21, %v3176_v24  ;;  %v2111_v15 = vrot.slane %v3981_v21, %v3190_v30 }
 0x281   : > { %2835 = vmatprep.subr.bf16.mxu1 %v2834_v50  ;;  %v1924_v50 = vsel %vm749_vm4, %v3824_v56, %v1911_v58 }
 0x282   : > { %2837 = vmatpush1.bf16.msra.mxu1 %v2836_v61  ;;  %v3990_v61 = vor.u32 %v2767_v19, %v2766_v49  ;;  %v1974_v19 = vmul.f32 %v1943_v44, %v1924_v50 }
 0x283   : > { %v1995_v0 = vpop.permute.xlu1 %1994  ;;  %v3949_v28 = vpop.permute.xlu0 %1996 }
 0x284   : > { %4405 = vst [vmem:[#allocation12_spill] sm:$0xff] %v3949_v28  ;;  %v2031_v22 = vrot.slane %v3990_v61, %v3176_v24  ;;  %v2007_v51 = vsel %vm859_vm6, %v1995_v0, %v3949_v28  ;;  %v2027_v39 = vrot.slane %v3990_v61, %v3190_v30 }
 0x287   : > { %v3951_v25 = vpop.permute.xlu1 %2074  ;;  %v3953_v18 = vpop.permute.xlu0 %2080 }
 0x288   : > { %4406 = vst [vmem:[#allocation13_spill] sm:$0xff] %v3953_v18 }
 0x28b   : > { %v2079_v41 = vpop.permute.xlu1 %2078  ;;  %v3955_v1 = vpop.permute.xlu0 %1652 }
 0x28c   : > { %4407 = vst [vmem:[#allocation14_spill] sm:$0xff] %v3955_v1  ;;  %v2091_v3 = vsel %vm945_vm5, %v2079_v41, %v3953_v18  ;;  %v2770_v18 = vld [vmem:[%s4375_s4 + $0x7] ss:$8 sm:$0xf]  ;;  %v2092_v44 = vsel %vm945_vm5, %v3895_v62, %v2079_v41  ;;  %v1663_v63 = vsel %vm435_vm1, %v3890_v55, %v3955_v1 }
 0x28d   : > { %v2143_v50 = vmul.f32 %v2115_v59, %v2091_v3  ;;  %v4035_v34 = vor.u32 %v2771_v37, %v2770_v18  ;;  %v2142_v3 = vmul.f32 %v2111_v15, %v2092_v44  ;;  %v4047_v1 = vmul.f32 %v1691_v35, %v1663_v63  ;;  %v4084_v44 = vld [vmem:[%s4374_s3] sm:$0xff] }
 0x28f   : > { %v3963_v52 = vpop.permute.xlu1 %2158  ;;  %v3965_v54 = vpop.permute.xlu0 %1656  ;;  %v2199_v37 = vrot.slane %v4035_v34, %v3176_v24  ;;  %v2195_v24 = vrot.slane %v4035_v34, %v3190_v30 }
 0x290   : > { %4408 = vst [vmem:[#allocation15_spill] sm:$0xff] %v3963_v52  ;;  %v1607_v52 = vrot.slane %v3855_v7, %v3517_v16 }
 0x293   : > { %v2163_v42 = vpop.permute.xlu1 %2162  ;;  %v3983_v43 = vpop.permute.xlu0 %2164 }
 0x294   : > { %4409 = vst [vmem:[#allocation16_spill] sm:$0xff] %v3983_v43 }
 0x297   : > { %v4003_v47 = vpop.permute.xlu0 %1736  ;;  %v4005_v49 = vpop.permute.xlu1 %1912 }
 0x298   : > { %4410 = vst [vmem:[#allocation17_spill] sm:$0xff] %v4005_v49  ;;  %v1923_v46 = vsel %vm749_vm4, %v1911_v58, %v4005_v49  ;;  %v2008_v58 = vsel %vm859_vm6, %v3888_v38, %v1995_v0  ;;  %v2059_v49 = vmul.f32 %v2031_v22, %v2007_v51  ;;  %v1747_v22 = vsel %vm545_vm3, %v3913_v2, %v4003_v47 }
 0x299   : > { %v1975_v28 = vmul.f32 %v1947_v8, %v1923_v46  ;;  %v2840_v8 = vpack.c.bf16 %v1974_v19, %v3666_v29  ;;  %v2058_v18 = vmul.f32 %v2027_v39, %v2008_v58  ;;  %v2175_v29 = vsel %vm1055_vm7, %v2163_v42, %v3983_v43 }
 0x29a   : > { %v2842_v0 = vpack.c.bf16 %v2143_v50, %v2059_v49  ;;  %v2176_v39 = vsel %vm1055_vm7, %v3919_v11, %v2163_v42 }
 0x29b   : > { %v4037_v41 = vpop.permute.xlu0 %1740  ;;  %v4039_v46 = vpop.permute.xlu1 %1568  ;;  %v2838_v59 = vpack.c.bf16 %v1975_v28, %v3668_v9  ;;  %v2844_v63 = vpack.c.bf16 %v2142_v3, %v2058_v18  ;;  %v1775_v28 = vrot.slane %v3917_v10, %v3517_v16  ;;  %v2226_v19 = vmul.f32 %v2195_v24, %v2176_v39 }
 0x29c   : > { %v1579_v55 = vsel %vm350_vm2, %v3859_v20, %v4039_v46  ;;  %v2227_v20 = vmul.f32 %v2199_v37, %v2175_v29  ;;  %v1591_v3 = vrot.slane %v3855_v7, %v3346_v6  ;;  %v1834_v37 = vsel %vm631_vm0, %v3853_v4, %v3921_v32 }
 0x29d   : > { %v4051_v51 = vmul.f32 %v1607_v52, %v1579_v55  ;;  %2839 = vmatprep.subr.bf16.mxu1 %v2838_v59  ;;  %v1859_v52 = vrot.slane %v3915_v26, %v3517_v16  ;;  %v4086_v50 = vmul.f32 %v1775_v28, %v1747_v22  ;;  %v4413_v55 = vmov 0.0  }
 0x29e   : > { %2841 = vmatpush1.bf16.msra.mxu1 %v2840_v8  ;;  %v1847_v8 = vrot.slane %v3915_v26, %v3333_v60  ;;  %v1675_v18 = vrot.slane %v3857_v5, %v3346_v6  ;;  %v1703_v29 = vrot.slane %v3857_v5, %v3372_v40  ;;  %v1750_v39 = vsel %vm545_vm3, %v3828_v48, %v3897_v57 }
 0x29f   : > { %v1575_v9 = vpop.permute.xlu0 %1574  ;;  %2843 = vmatprep.subr.bf16.mxu1 %v2842_v0  ;;  %v4058_v35 = vpop.permute.xlu1 %1572  ;;  %4411 = vst [vmem:[#allocation18_spill] sm:$0xff] %v4086_v50  ;;  %v1619_v0 = vrot.slane %v3855_v7, %v3372_v40  ;;  %v1759_v28 = vrot.slane %v3917_v10, %v3346_v6 }
 0x2a0   : > { %v1583_v24 = vsel %vm350_vm2, %v1575_v9, %v3818_v53  ;;  %v1576_v32 = vsel %vm350_vm2, %v4058_v35, %v1575_v9  ;;  %v1843_v53 = vrot.slane %v3915_v26, %v3346_v6  ;;  %v1925_v9 = vsel %vm749_vm4, %v3940_v31, %v3824_v56 }
 0x2a1   : > { %v1628_v58 = vmul.f32 %v1591_v3, %v1583_v24  ;;  %v1635_v15 = vmul.f32 %v1619_v0, %v1576_v32 }
 0x2a2   : > { %2845 = vmatpush1.bf16.msra.mxu1 %v2844_v63  ;;  %v1763_v63 = vrot.slane %v3917_v10, %v3333_v60 }
 0x2a3   : > { %v4073_v49 = vpop.permute.xlu0 %1742  ;;  %2410 = vmatprep.subr.mxu1 %v2227_v20  ;;  %v4075_v30 = vpop.permute.xlu1 %1820  ;;  %v1939_v20 = vrot.slane %v3973_v33, %v3333_v60 }
 0x2a4   : > { %v1831_v42 = vsel %vm631_vm0, %v3942_v36, %v4075_v30  ;;  %v1751_v56 = vsel %vm545_vm3, %v4073_v49, %v3828_v48 }
 0x2a5   : > { %v4088_v2 = vmul.f32 %v1859_v52, %v1831_v42  ;;  %v1973_v24 = vmul.f32 %v1939_v20, %v1925_v9  ;;  %v2094_v20 = vsel %vm945_vm5, %v3911_v13, %v3951_v25  ;;  %v4414_v9 = vld [vmem:[#allocation5_spill] sm:$0xff] }
 0x2a6   : > { %2411 = vmatpush1.msra.mxu1 %v2226_v19  ;;  %v1881_v19 = vmul.f32 %v1847_v8, %v1834_v37  ;;  %v1935_v8 = vrot.slane %v3973_v33, %v3346_v6  ;;  %v2019_v37 = vrot.slane %v3990_v61, %v3346_v6 }
 0x2a7   : > { %4412 = vst [vmem:[#allocation19_spill] sm:$0xff] %v4088_v2  ;;  %v4092_v59 = vpop.permute.xlu0 %2000  ;;  %2773 = vmatmul.mubr.msk.f32.vlgmr.msra.gmra.mrb[2].mxu1 %vm2319_vm9, %v4084_v44  ;;  %v4096_v36 = vpop.permute.xlu1 %1824  ;;  %v1797_v2 = vmul.f32 %v1763_v63, %v1750_v39  ;;  %v1926_v63 = vsel %vm749_vm4, %v3868_v12, %v3940_v31  ;;  %v2103_v39 = vrot.slane %v3981_v21, %v3346_v6 }
 0x2a8   : > { %2600 = vmatprep.mubr.f32.mxu1 %v4413_v55  ;;  %v2023_v55 = vrot.slane %v3990_v61, %v3333_v60  ;;  %v2187_v31 = vrot.slane %v4035_v34, %v3346_v6 }
 0x2a9   : > { %v2818_v32 = vpack.c.bf16 %v1881_v19, %v1797_v2  ;;  %v1972_v2 = vmul.f32 %v1935_v8, %v1926_v63  ;;  %v1615_v19 = vrot.slane %v3855_v7, %v3393_v17  ;;  %v1863_v8 = vrot.slane %v3915_v26, %v3522_v27 }
 0x2ab   : > { %v1659_v52 = vpop.permute.xlu1 %1658  ;;  %v4129_v22 = vpop.permute.xlu0 %1570 }
 0x2ac   : > { %v1660_v57 = vsel %vm435_vm1, %v3965_v54, %v1659_v52  ;;  %v1667_v42 = vsel %vm435_vm1, %v1659_v52, %v3816_v45  ;;  %v2107_v45 = vrot.slane %v3981_v21, %v3333_v60 }
 0x2ad   : > { %v1712_v43 = vmul.f32 %v1675_v18, %v1667_v42  ;;  %v1719_v50 = vmul.f32 %v1703_v29, %v1660_v57  ;;  %v2822_v57 = vpack.c.bf16 %v1973_v24, %v4414_v9 }
 0x2af   : > { %v2816_v3 = vpack.c.bf16 %v1712_v43, %v1628_v58  ;;  %v1827_v0 = vpop.permute.xlu1 %1826  ;;  %v4155_v18 = vpop.permute.xlu0 %1822  ;;  %v2862_v29 = vpack.c.bf16 %v1719_v50, %v1635_v15  ;;  %v2093_v43 = vsel %vm945_vm5, %v3951_v25, %v3895_v62  ;;  %v1796_v15 = vmul.f32 %v1759_v28, %v1751_v56 }
 0x2b0   : > { %v1835_v48 = vsel %vm631_vm0, %v1827_v0, %v3853_v4  ;;  %v2191_v58 = vrot.slane %v4035_v34, %v3333_v60  ;;  %v1787_v4 = vrot.slane %v3917_v10, %v3372_v40  ;;  %v2009_v62 = vsel %vm859_vm6, %v3947_v14, %v3888_v38  ;;  %v4415_v38 = vld [vmem:[#allocation10_spill] sm:$0xff] }
 0x2b1   : > { %v1880_v50 = vmul.f32 %v1843_v53, %v1835_v48  ;;  %2817 = vmatpush1.bf16.msra.mxu0 %v2816_v3  ;;  %2863 = vmatprep.subr.bf16.mxu1 %v2862_v29  ;;  %v2141_v52 = vmul.f32 %v2107_v45, %v2093_v43  ;;  %v1611_v53 = vrot.slane %v3855_v7, %v3522_v27  ;;  %v4417_v43 = vld [vmem:[#allocation15_spill] sm:$0xff] }
 0x2b2   : > { %2819 = vmatprep.subr.bf16.mxu0 %v2818_v32  ;;  %v2010_v42 = vsel %vm859_vm6, %v4415_v38, %v3947_v14  ;;  %v1871_v25 = vrot.slane %v3915_v26, %v3372_v40  ;;  %v1867_v56 = vrot.slane %v3915_v26, %v3393_v17  ;;  %v2057_v45 = vmul.f32 %v2023_v55, %v2009_v62  ;;  %v4416_v14 = vld [vmem:[#allocation4_spill] sm:$0xff] }
 0x2b3   : > { %v2820_v6 = vpack.c.bf16 %v1880_v50, %v1796_v15  ;;  %v4184_v28 = vpop.permute.xlu1 %1916  ;;  %v4186_v60 = vpop.permute.xlu0 %1914  ;;  %v2140_v3 = vmul.f32 %v2103_v39, %v2094_v20  ;;  %v1951_v7 = vrot.slane %v3973_v33, %v3517_v16  ;;  %v1955_v29 = vrot.slane %v3973_v33, %v3522_v27 }
 0x2b4   : > { %v2824_v63 = vpack.c.bf16 %v1972_v2, %v4416_v14  ;;  %v1959_v48 = vrot.slane %v3973_v33, %v3393_v17  ;;  %v1963_v26 = vrot.slane %v3973_v33, %v3372_v40  ;;  %v1695_v55 = vrot.slane %v3857_v5, %v3522_v27  ;;  %v4419_v14 = vld [vmem:[#allocation14_spill] sm:$0xff] }
 0x2b5   : > { %2821 = vmatpush1.bf16.msra.mxu0 %v2820_v6  ;;  %v2056_v39 = vmul.f32 %v2019_v37, %v2010_v42  ;;  %v2177_v15 = vsel %vm1055_vm7, %v4417_v43, %v3919_v11  ;;  %v1578_v50 = vsel %vm350_vm2, %v4039_v46, %v4129_v22  ;;  %v2826_v2 = vpack.c.bf16 %v2141_v52, %v2057_v45 }
 0x2b6   : > { %2823 = vmatprep.subr.bf16.mxu0 %v2822_v57  ;;  %v1577_v62 = vsel %vm350_vm2, %v4129_v22, %v4058_v35  ;;  %v1699_v37 = vrot.slane %v3857_v5, %v3393_v17  ;;  %v2119_v20 = vrot.slane %v3981_v21, %v3517_v16  ;;  %v2123_v11 = vrot.slane %v3981_v21, %v3522_v27  ;;  %v4418_v5 = vld [vmem:[#allocation11_spill] sm:$0xff] }
 0x2b7   : > { %v4208_v24 = vpop.permute.xlu1 %2084  ;;  %v1919_v32 = vpop.permute.xlu0 %1918  ;;  %v2828_v6 = vpack.c.bf16 %v2140_v3, %v2056_v39  ;;  %v1828_v46 = vsel %vm631_vm0, %v4096_v36, %v1827_v0  ;;  %v1779_v52 = vrot.slane %v3917_v10, %v3522_v27  ;;  %v1783_v35 = vrot.slane %v3917_v10, %v3393_v17 }
 0x2b8   : > { %v2178_v22 = vsel %vm1055_vm7, %v4418_v5, %v4417_v43  ;;  %v2225_v9 = vmul.f32 %v2191_v58, %v2177_v15  ;;  %v1744_v57 = vsel %vm545_vm3, %v4037_v41, %v4073_v49  ;;  %v1633_v42 = vmul.f32 %v1611_v53, %v1578_v50 }
 0x2b9   : > { %2825 = vmatpush1.bf16.msra.mxu0 %v2824_v63  ;;  %v1634_v45 = vmul.f32 %v1615_v19, %v1577_v62  ;;  %v1830_v3 = vsel %vm631_vm0, %v4075_v30, %v4155_v18  ;;  %v1887_v63 = vmul.f32 %v1871_v25, %v1828_v46  ;;  %v1829_v49 = vsel %vm631_vm0, %v4155_v18, %v4096_v36  ;;  %v4420_v46 = vld [vmem:[#allocation17_spill] sm:$0xff] }
 0x2ba   : > { %2827 = vmatprep.subr.bf16.mxu0 %v2826_v2  ;;  %v2224_v43 = vmul.f32 %v2187_v31, %v2178_v22  ;;  %v1803_v30 = vmul.f32 %v1787_v4, %v1744_v57  ;;  %v2127_v15 = vrot.slane %v3981_v21, %v3393_v17  ;;  %v1885_v25 = vmul.f32 %v1863_v8, %v1830_v3 }
 0x2bb   : > { %v1655_v0 = vpop.permute.xlu1 %1654  ;;  %v2083_v39 = vpop.permute.xlu0 %2082  ;;  %v1921_v36 = vsel %vm749_vm4, %v4186_v60, %v4184_v28  ;;  %v1886_v2 = vmul.f32 %v1867_v56, %v1829_v49  ;;  %v1920_v31 = vsel %vm749_vm4, %v4184_v28, %v1919_v32  ;;  %v1922_v56 = vsel %vm749_vm4, %v4420_v46, %v4186_v60  ;;  %v4425_v49 = vld [vmem:[#allocation12_spill] sm:$0xff] }
 0x2bc   : > { %v1661_v10 = vsel %vm435_vm1, %v1655_v0, %v3965_v54  ;;  %v1662_v58 = vsel %vm435_vm1, %v4419_v14, %v1655_v0  ;;  %v1927_v54 = vsel %vm749_vm4, %v1919_v32, %v3868_v12  ;;  %v1977_v22 = vmul.f32 %v1955_v29, %v1921_v36  ;;  %v4429_v36 = vld [vmem:[#allocation18_spill] sm:$0xff] }
 0x2bd   : > { %v1717_v53 = vmul.f32 %v1695_v55, %v1662_v58  ;;  %v1718_v19 = vmul.f32 %v1699_v37, %v1661_v10  ;;  %2829 = vmatpush1.bf16.msra.mxu0 %v2828_v6  ;;  %v1979_v8 = vmul.f32 %v1963_v26, %v1927_v54  ;;  %v2866_v6 = vpack.c.bf16 %v1887_v63, %v1803_v30  ;;  %v4424_v58 = vld [vmem:[#allocation6_spill] sm:$0xff] }
 0x2be   : > { %2339 = vmatprep.subr.mxu0 %v2225_v9  ;;  %v1978_v28 = vmul.f32 %v1959_v48, %v1920_v31  ;;  %v2035_v60 = vrot.slane %v3990_v61, %v3517_v16  ;;  %v4421_v9 = vpack.c.bf16 %v4047_v1, %v4051_v51  ;;  %v4422_v48 = vmov 0.0   ;;  %v4431_v31 = vld [vmem:[#allocation8_spill] sm:$0xff] }
 0x2bf   : > { %v2864_v18 = vpack.c.bf16 %v1718_v19, %v1634_v45  ;;  %v1739_v55 = vpop.permute.xlu1 %1738  ;;  %v2846_v50 = vpack.c.bf16 %v1717_v53, %v1633_v42  ;;  %v2087_v26 = vpop.permute.xlu0 %2086  ;;  %v2089_v57 = vsel %vm945_vm5, %v2083_v39, %v4208_v24  ;;  %v4423_v42 = vld [vmem:[#allocation7_spill] sm:$0xff]  ;;  %v2043_v45 = vrot.slane %v3990_v61, %v3393_v17  ;;  %v4426_v53 = vld [vmem:[#allocation9_spill] sm:$0xff] }
 0x2c0   : > { %v1745_v12 = vsel %vm545_vm3, %v1739_v55, %v4037_v41  ;;  %v1746_v4 = vsel %vm545_vm3, %v4003_v47, %v1739_v55  ;;  %v2039_v41 = vrot.slane %v3990_v61, %v3522_v27  ;;  %v2870_v0 = vpack.c.bf16 %v1979_v8, %v4423_v42 }
 0x2c1   : > { %v1801_v62 = vmul.f32 %v1779_v52, %v1746_v4  ;;  %v1802_v37 = vmul.f32 %v1783_v35, %v1745_v12  ;;  %2340 = vmatpush1.msra.mxu0 %v2224_v43  ;;  %2865 = vmatpush1.bf16.msra.mxu1 %v2864_v18  ;;  %v2131_v35 = vrot.slane %v3981_v21, %v3372_v40  ;;  %v4432_v21 = vld [vmem:[#allocation16_spill] sm:$0xff] }
 0x2c2   : > { %2772 = vmatmul.mubr.msk.f32.vlgmr.msra.gmra.mrb[2].mxu0 %vm2319_vm9, %v4084_v44  ;;  %2847 = vmatprep.subr.bf16.mxu0 %v2846_v50  ;;  %v2047_v3 = vrot.slane %v3990_v61, %v3372_v40  ;;  %v1976_v1 = vmul.f32 %v1951_v7, %v1922_v56  ;;  %v2088_v51 = vsel %vm945_vm5, %v4208_v24, %v2087_v26  ;;  %v4427_v24 = vld [vmem:[#allocation13_spill] sm:$0xff] }
 0x2c3   : > { %v2868_v47 = vpack.c.bf16 %v1886_v2, %v1802_v37  ;;  %2867 = vmatprep.subr.bf16.mxu1 %v2866_v6  ;;  %v1999_v32 = vpop.permute.xlu1 %1998  ;;  %v2850_v52 = vpack.c.bf16 %v1885_v25, %v1801_v62  ;;  %2849 = vmatpush1.bf16.msra.mxu0 %v4421_v9  ;;  %v2095_v10 = vsel %vm945_vm5, %v2087_v26, %v3911_v13  ;;  %v4428_v25 = vld [vmem:[#allocation19_spill] sm:$0xff]  ;;  %v2169_v12 = vpop.permute.xlu0 %2168 }
 0x2c4   : > { %v2005_v29 = vsel %vm859_vm6, %v1999_v32, %v4092_v59  ;;  %2529 = vmatprep.mubr.f32.mxu0 %v4422_v48  ;;  %v2207_v14 = vrot.slane %v4035_v34, %v3522_v27  ;;  %v2872_v63 = vpack.c.bf16 %v1978_v28, %v4424_v58  ;;  %v2006_v61 = vsel %vm859_vm6, %v4425_v49, %v1999_v32 }
 0x2c5   : > { %2851 = vmatprep.subr.bf16.mxu0 %v2850_v52  ;;  %2869 = vmatpush1.bf16.msra.mxu1 %v2868_v47  ;;  %v2061_v33 = vmul.f32 %v2039_v41, %v2005_v29  ;;  %v2854_v19 = vpack.c.bf16 %v1977_v22, %v4426_v53  ;;  %v2090_v43 = vsel %vm945_vm5, %v4427_v24, %v2083_v39 }
 0x2c6   : > { %2871 = vmatprep.subr.bf16.mxu1 %v2870_v0  ;;  %v2145_v13 = vmul.f32 %v2123_v11, %v2089_v57  ;;  %v4430_v18 = vpack.c.bf16 %v4428_v25, %v4429_v36  ;;  %v2146_v55 = vmul.f32 %v2127_v15, %v2088_v51  ;;  %v2147_v50 = vmul.f32 %v2131_v35, %v2095_v10 }
 0x2c7   : > { %v2003_v7 = vpop.permute.xlu1 %2002  ;;  %v2856_v27 = vpack.c.bf16 %v1976_v1, %v4431_v31  ;;  %v2060_v11 = vmul.f32 %v2035_v60, %v2006_v61  ;;  %v2211_v6 = vrot.slane %v4035_v34, %v3393_v17  ;;  %v2215_v46 = vrot.slane %v4035_v34, %v3372_v40 }
 0x2c8   : > { %v2004_v30 = vsel %vm859_vm6, %v4092_v59, %v2003_v7  ;;  %v2011_v54 = vsel %vm859_vm6, %v2003_v7, %v4415_v38  ;;  %2853 = vmatpush1.bf16.msra.mxu0 %v4430_v18  ;;  %v2858_v8 = vpack.c.bf16 %v2145_v13, %v2061_v33  ;;  %v2144_v38 = vmul.f32 %v2119_v20, %v2090_v43 }
 0x2c9   : > { %v2062_v2 = vmul.f32 %v2043_v45, %v2004_v30  ;;  %v2063_v39 = vmul.f32 %v2047_v3, %v2011_v54  ;;  %2855 = vmatprep.subr.bf16.mxu0 %v2854_v19  ;;  %2873 = vmatpush1.bf16.msra.mxu1 %v2872_v63  ;;  %v2203_v22 = vrot.slane %v4035_v34, %v3517_v16 }
 0x2ca   : > { %v2860_v56 = vpack.c.bf16 %v2144_v38, %v2060_v11 }
 0x2cb   : > { %v2876_v4 = vpack.c.bf16 %v2146_v55, %v2062_v2  ;;  %v2167_v59 = vpop.permute.xlu1 %2166  ;;  %v2874_v62 = vpack.c.bf16 %v2147_v50, %v2063_v39 }
 0x2cc   : > { %v2173_v15 = vsel %vm1055_vm7, %v2167_v59, %v2169_v12  ;;  %2857 = vmatpush1.bf16.msra.mxu0 %v2856_v27  ;;  %v2174_v20 = vsel %vm1055_vm7, %v4432_v21, %v2167_v59 }
 0x2cd   : > { %v2229_v37 = vmul.f32 %v2207_v14, %v2173_v15  ;;  %2859 = vmatprep.subr.bf16.mxu0 %v2858_v8  ;;  %2875 = vmatprep.subr.bf16.mxu1 %v2874_v62  ;;  %v2228_v26 = vmul.f32 %v2203_v22, %v2174_v20 }
 0x2ce   : > { %2877 = vmatpush1.bf16.msra.mxu1 %v2876_v4 }
 0x2cf   : > { %v2171_v41 = vpop.permute.xlu1 %2170 }
 0x2d0   : > { %v2172_v28 = vsel %vm1055_vm7, %v2169_v12, %v2171_v41  ;;  %v2179_v17 = vsel %vm1055_vm7, %v2171_v41, %v4418_v5  ;;  %2861 = vmatpush1.bf16.msra.mxu0 %v2860_v56 }
 0x2d1   : > { %v2230_v40 = vmul.f32 %v2211_v6, %v2172_v28  ;;  %v2231_v47 = vmul.f32 %v2215_v46, %v2179_v17  ;;  %2481 = vmatprep.subr.mxu0 %v2229_v37 }
 0x2d3   : > { %2552 = vmatprep.subr.mxu1 %v2231_v47 }
 0x2d4   : > { %2482 = vmatpush1.msra.mxu0 %v2228_v26  ;;  %2553 = vmatpush1.msra.mxu1 %v2230_v40  ;;  %v1518_v34 = vpop.permute.xlu0 %1517 }
 0x2d5   : > { %2774 = vmatmul.mubr.msk.f32.vlgmr.msra.gmra.mrb[6].mxu0 %vm2319_vm9, %v4084_v44  ;;  %2775 = vmatmul.mubr.msk.f32.vlgmr.msra.gmra.mrb[6].mxu1 %vm2319_vm9, %v4084_v44 }
 0x2e0   : > { %v2317_v16 = vpop.permute.xlu1 %2316 }
 0x2e1   : > { %v2878_v32 = vadd.f32 %v2317_v16, %v1518_v34 }
 0x37a   : > { %v2460_v23 = vpop.f32.mrb[2].mxu1 }
 0x37b   : > { %v2883_v5 = vadd.f32 %v2878_v32, %v2460_v23  ;;  %v2462_v52 = vpop.f32.mrb[3].mxu1 }
 0x37c   : > { %v2885_v35 = vadd.f32 %v2878_v32, %v2462_v52 }
 0x37d   : > { %2617 = vst [vmem:[%s306_s19 + $0x10] sm:$0xff] %v2883_v5 }
 0x37e   : > { %2618 = vst [vmem:[%s306_s19 + $0x18] sm:$0xff] %v2885_v35 }
 0x395   : > { %v2389_v60 = vpop.f32.mrb[2].mxu0 }
 0x396   : > { %v2879_v29 = vadd.f32 %v2878_v32, %v2389_v60  ;;  %v2391_v9 = vpop.f32.mrb[3].mxu0 }
 0x397   : > { %v2881_v48 = vadd.f32 %v2878_v32, %v2391_v9 }
 0x398   : > { %2615 = vst [vmem:[%s306_s19] sm:$0xff] %v2879_v29 }
 0x399   : > { %2616 = vst [vmem:[%s306_s19 + $0x8] sm:$0xff] %v2881_v48 }
 0x3a8   : > { %v2531_v44 = vpop.f32.mrb[6].mxu0  ;;  %v2602_v57 = vpop.f32.mrb[6].mxu1 }
 0x3a9   : > { %v2887_v42 = vadd.f32 %v2878_v32, %v2531_v44  ;;  %v2533_v0 = vpop.f32.mrb[7].mxu0  ;;  %v2891_v45 = vadd.f32 %v2878_v32, %v2602_v57  ;;  %v2604_v3 = vpop.f32.mrb[7].mxu1 }
 0x3aa   : > { %v2889_v1 = vadd.f32 %v2878_v32, %v2533_v0  ;;  %v2893_v51 = vadd.f32 %v2878_v32, %v2604_v3 }
 0x3ab   : > { %2619 = vst [vmem:[%s306_s19 + $0x20] sm:$0xff] %v2887_v42  ;;  %2621 = vst [vmem:[%s306_s19 + $0x30] sm:$0xff] %v2891_v45 }
 0x3ac   : > { %2620 = vst [vmem:[%s306_s19 + $0x28] sm:$0xff] %v2889_v1  ;;  %2622 = vst [vmem:[%s306_s19 + $0x38] sm:$0xff] %v2893_v51 }
 0x3ad PF: > { %s18_s24 = sadd.s32 1, %s2941_s24  }
 0x3ae   : > { %p15_p4 = scmp.ge.s32.totalorder %s18_s24, 4  }
 0x3b0   :  { %17 = sbr.rel (!%p15_p4) target bundleno = 1 (0x1), region = 96 }

</bundles_post_ra>
